<compile_context>
chip_gen: v7x
topology: tpu7x:2x2x1
jax: 0.10.0
libtpu: 0.0.40
codegen_flags: <defaults>
</compile_context>

<pallas_src>
import jax
import jax.numpy as jnp
from jax.experimental import pallas as pl
from jax.experimental.pallas import tpu as pltpu


# ------------------------------ Pallas kernel ------------------------------

def _additive_kernel(q_ref, k_ref, u_ref, t_ref, b_ref, w_ref, wb_ref, o_ref):
    # q_ref : (1, nt, d) bf16 VMEM     k_ref : (1, m, d) bf16 VMEM
    # u_ref : (d, d)     bf16 VMEM     t_ref : (d, d)    bf16 VMEM
    # b_ref : (1, d)     f32  VMEM
    # w_ref : (1, d)     f32  SMEM     wb_ref: (1, 1)    f32  SMEM
    # o_ref : (1, nt, m) f32  VMEM
    nt = q_ref.shape[1]
    m = k_ref.shape[1]
    d = q_ref.shape[2]

    q = q_ref[0]                                                     # (nt, d) bf16
    k = k_ref[0]                                                     # (m,  d) bf16

    # Projections on the MXU (bf16 operands, f32 accumulate).
    qu = jnp.dot(q, u_ref[...], preferred_element_type=jnp.float32)   # (nt, d)
    ktb = jnp.dot(k, t_ref[...], preferred_element_type=jnp.float32)  # (m, d)
    ktb = ktb + b_ref[...]                      # bias broadcast over the m rows
    ktb_t = ktb.T                               # (d, m): ONE small XLU transpose
                                                # -> puts m on the lane axis.

    # Lane-dense accumulation over d: each iteration builds an (nt, m) slab
    # (lane axis = m), applies tanh on the EUP, and folds the Linear(d,1)
    # weight as a scalar multiply-accumulate (VPU). No cross-lane reduce and
    # no (n, m, d) intermediate ever materializes.
    # NOTE: for large d, chunk this loop (e.g. blocks of 8) to bound code size;
    # on v6e/v7x, doing the add/tanh in bf16 would double EUP throughput
    # (kept f32 here for v5e portability).
    acc = jnp.full((nt, m), wb_ref[0, 0], dtype=jnp.float32)
    for e in range(d):                                   # static unroll (d = 32)
        pre = qu[:, e:e + 1] + ktb_t[e:e + 1, :]         # (nt,1)+(1,m) -> (nt, m)
        acc = acc + w_ref[0, e] * jnp.tanh(pre)          # EUP tanh + VPU fma

    o_ref[0] = acc.astype(o_ref.dtype)                   # one contiguous slab store


# ------------------------------- wrapper -----------------------------------

def additive_forward(params, queries, keys, *, nt=None):
    """Fused Additive similarity: returns (B, n, m) float32 scores."""
    B, n, d = queries.shape
    _, m, _ = keys.shape
    if nt is None:
        nt = n                       # full-n block at small shapes
    assert n % nt == 0 and (nt % 8 == 0 or nt == n), "nt must tile n (multiple of 8)"

    # bf16 MXU operands (halves Q/K/U/T DMA); f32 accumulate in-kernel.
    q16 = queries.astype(jnp.bfloat16)
    k16 = keys.astype(jnp.bfloat16)
    u16 = params["U"].astype(jnp.bfloat16)
    t16 = params["T"].astype(jnp.bfloat16)

    flops = 2 * B * d * d * (n + m) + 3 * B * n * m * d
    transcendentals = B * n * m * d
    bytes_accessed = (2 * B * d * (n + m)          # Q, K (bf16)
                      + 2 * 2 * d * d              # U, T (bf16)
                      + 4 * (2 * d + 1)            # b, w, wb (f32)
                      + 4 * B * n * m)             # out (f32)

    return pl.pallas_call(
        _additive_kernel,
        out_shape=jax.ShapeDtypeStruct((B, n, m), jnp.float32),
        grid=(B, n // nt),
        in_specs=[
            pl.BlockSpec((1, nt, d), lambda b, i: (b, i, 0)),      # queries tile
            pl.BlockSpec((1, m, d), lambda b, i: (b, 0, 0)),       # keys (full m)
            pl.BlockSpec((d, d), lambda b, i: (0, 0)),             # U (resident)
            pl.BlockSpec((d, d), lambda b, i: (0, 0)),             # T (resident)
            pl.BlockSpec((1, d), lambda b, i: (0, 0)),             # bias (resident)
            pl.BlockSpec(memory_space=pltpu.MemorySpace.SMEM),     # w  (scalars)
            pl.BlockSpec(memory_space=pltpu.MemorySpace.SMEM),     # wb (scalar)
        ],
        out_specs=pl.BlockSpec((1, nt, m), lambda b, i: (b, i, 0)),
        compiler_params=pltpu.CompilerParams(
            dimension_semantics=("parallel", "parallel")),
        cost_estimate=pl.CostEstimate(
            flops=flops, transcendentals=transcendentals,
            bytes_accessed=bytes_accessed),
    )(q16, k16, u16, t16, params["b"], params["w"], params["wb"])


# ------------------------------- parameters --------------------------------

def init_params(key, d):
    """Deterministic parameters mirroring the PyTorch module's init."""
    ks = jax.random.split(key, 5)
    orth = jax.nn.initializers.orthogonal()
    U = orth(ks[0], (d, d), jnp.float32)                        # orthogonal_(U)
    T = orth(ks[1], (d, d), jnp.float32)                        # orthogonal_(T)
    b = jax.random.uniform(ks[2], (1, d), jnp.float32, -0.1, 0.1)
    lim = d ** -0.5                                             # nn.Linear default
    w = jax.random.uniform(ks[3], (1, d), jnp.float32, -lim, lim)    # Linear(d,1).weight
    wb = jax.random.uniform(ks[4], (1, 1), jnp.float32, -lim, lim)   # Linear(d,1).bias
    return {"U": U, "T": T, "b": b, "w": w, "wb": wb}


# ---------------------------------- main ------------------------------------

if __name__ == "__main__":
    B, n, m, d = 2, 8, 16, 32

    root = jax.random.PRNGKey(0)
    k_in, k_par = jax.random.split(root)
    kq, kk = jax.random.split(k_in)

    queries = jax.random.normal(kq, (B, n, d), jnp.float32)
    keys = jax.random.normal(kk, (B, m, d), jnp.float32)
    params = init_params(k_par, d)

    scores = additive_forward(params, queries, keys)
    jax.block_until_ready(scores)

    # Reference mirroring the PyTorch broadcast chain, computed in f32 on the
    # same bf16-rounded Q/K/U/T that the kernel feeds the MXU (isolates the
    # intended bf16 input quantization from semantic errors).
    f32 = jnp.float32
    qr = queries.astype(jnp.bfloat16).astype(f32)
    kr = keys.astype(jnp.bfloat16).astype(f32)
    Ur = params["U"].astype(jnp.bfloat16).astype(f32)
    Tr = params["T"].astype(jnp.bfloat16).astype(f32)
    hp = jax.lax.Precision.HIGHEST
    qU = jnp.einsum("bnd,de->bne", qr, Ur, precision=hp)            # (B, n, d)
    kT = jnp.einsum("bmd,de->bme", kr, Tr, precision=hp)            # (B, m, d)
    pre = qU[:, None, :, :] + kT[:, :, None, :] + params["b"].reshape(1, 1, 1, d)
    ref = jnp.einsum("bmnd,d->bmn", jnp.tanh(pre), params["w"][0], precision=hp)
    ref = ref + params["wb"][0, 0]
    ref = jnp.transpose(ref, (0, 2, 1))                             # (B, n, m)

    assert scores.shape == (B, n, m)
    err = float(jnp.max(jnp.abs(scores - ref)))
    assert err < 1e-2, err
    print("KERNEL_OK")
</pallas_src>

<mosaic_0001>
module attributes {stable_mosaic.version = 11 : i64} {
  func.func @_additive_kernel(%arg0: i32, %arg1: i32, %arg2: memref<1x8x32xbf16, #tpu.memory_space<vmem>>, %arg3: memref<1x16x32xbf16, #tpu.memory_space<vmem>>, %arg4: memref<32x32xbf16, #tpu.memory_space<vmem>>, %arg5: memref<32x32xbf16, #tpu.memory_space<vmem>>, %arg6: memref<1x32xf32, #tpu.memory_space<vmem>>, %arg7: memref<1x32xf32, #tpu.memory_space<smem>>, %arg8: memref<1x1xf32, #tpu.memory_space<smem>>, %arg9: memref<1x8x16xf32, #tpu.memory_space<vmem>>) attributes {dimension_semantics = [#tpu.dimension_semantics<parallel>, #tpu.dimension_semantics<parallel>], iteration_bounds = array<i64: 2, 1>, scalar_prefetch = 0 : i64, scratch_operands = 0 : i64, tpu.core_type = #tpu.core_type<tc>, window_params = [{transform_indices = @transform_0, window_bounds = array<i64: 1, 8, 32>}, {transform_indices = @transform_1, window_bounds = array<i64: 1, 16, 32>}, {pipeline_mode = #tpu.pipeline_mode<synchronous>, transform_indices = @transform_2, window_bounds = array<i64: 32, 32>}, {pipeline_mode = #tpu.pipeline_mode<synchronous>, transform_indices = @transform_3, window_bounds = array<i64: 32, 32>}, {pipeline_mode = #tpu.pipeline_mode<synchronous>, transform_indices = @transform_4, window_bounds = array<i64: 1, 32>}, {transform_indices = @transform_5, window_bounds = array<i64: 1, 32>}, {transform_indices = @transform_6, window_bounds = array<i64: 1, 1>}, {transform_indices = @transform_7, window_bounds = array<i64: 1, 8, 16>}]} {
    %c0 = arith.constant 0 : index
    %c0_0 = arith.constant 0 : index
    %c0_1 = arith.constant 0 : index
    %0 = vector.load %arg2[%c0, %c0_0, %c0_1] : memref<1x8x32xbf16, #tpu.memory_space<vmem>>, vector<1x8x32xbf16>
    %1 = vector.shape_cast %0 : vector<1x8x32xbf16> to vector<8x32xbf16>
    %c0_2 = arith.constant 0 : index
    %c0_3 = arith.constant 0 : index
    %c0_4 = arith.constant 0 : index
    %2 = vector.load %arg3[%c0_2, %c0_3, %c0_4] : memref<1x16x32xbf16, #tpu.memory_space<vmem>>, vector<1x16x32xbf16>
    %3 = vector.shape_cast %2 : vector<1x16x32xbf16> to vector<16x32xbf16>
    %c0_5 = arith.constant 0 : index
    %c0_6 = arith.constant 0 : index
    %4 = vector.load %arg4[%c0_5, %c0_6] : memref<32x32xbf16, #tpu.memory_space<vmem>>, vector<32x32xbf16>
    %cst = arith.constant dense<0.000000e+00> : vector<8x32xf32>
    %5 = tpu.matmul %1, %4, %cst {dimension_numbers = #tpu.dot_dimension_numbers<[1], [0], [0], [1], [0, 0, 1, 1], [], []>} : vector<8x32xbf16>, vector<32x32xbf16>, vector<8x32xf32> -> vector<8x32xf32>
    %c0_7 = arith.constant 0 : index
    %c0_8 = arith.constant 0 : index
    %6 = vector.load %arg5[%c0_7, %c0_8] : memref<32x32xbf16, #tpu.memory_space<vmem>>, vector<32x32xbf16>
    %cst_9 = arith.constant dense<0.000000e+00> : vector<16x32xf32>
    %7 = tpu.matmul %3, %6, %cst_9 {dimension_numbers = #tpu.dot_dimension_numbers<[1], [0], [0], [1], [0, 0, 1, 1], [], []>} : vector<16x32xbf16>, vector<32x32xbf16>, vector<16x32xf32> -> vector<16x32xf32>
    %c0_10 = arith.constant 0 : index
    %c0_11 = arith.constant 0 : index
    %8 = vector.load %arg6[%c0_10, %c0_11] : memref<1x32xf32, #tpu.memory_space<vmem>>, vector<1x32xf32>
    %9 = vector.broadcast %8 : vector<1x32xf32> to vector<16x32xf32>
    %10 = arith.addf %7, %9 : vector<16x32xf32>
    %11 = tpu.transpose %10, [1, 0] : vector<16x32xf32> -> vector<32x16xf32>
    %c0_12 = arith.constant 0 : index
    %c0_13 = arith.constant 0 : index
    %12 = memref.load %arg8[%c0_12, %c0_13] : memref<1x1xf32, #tpu.memory_space<smem>>
    %13 = vector.broadcast %12 : f32 to vector<8x16xf32>
    %14 = vector.extract_strided_slice %5 {offsets = [0, 0], sizes = [8, 1], strides = [1, 1]} : vector<8x32xf32> to vector<8x1xf32>
    %15 = vector.extract_strided_slice %11 {offsets = [0, 0], sizes = [1, 16], strides = [1, 1]} : vector<32x16xf32> to vector<1x16xf32>
    %16 = vector.broadcast %14 : vector<8x1xf32> to vector<8x16xf32>
    %17 = vector.broadcast %15 : vector<1x16xf32> to vector<8x16xf32>
    %18 = arith.addf %16, %17 : vector<8x16xf32>
    %c0_14 = arith.constant 0 : index
    %c0_15 = arith.constant 0 : index
    %19 = memref.load %arg7[%c0_14, %c0_15] : memref<1x32xf32, #tpu.memory_space<smem>>
    %20 = math.tanh %18 : vector<8x16xf32>
    %21 = vector.broadcast %19 : f32 to vector<8x16xf32>
    %22 = arith.mulf %21, %20 : vector<8x16xf32>
    %23 = arith.addf %13, %22 : vector<8x16xf32>
    %24 = vector.extract_strided_slice %5 {offsets = [0, 1], sizes = [8, 1], strides = [1, 1]} : vector<8x32xf32> to vector<8x1xf32>
    %25 = vector.extract_strided_slice %11 {offsets = [1, 0], sizes = [1, 16], strides = [1, 1]} : vector<32x16xf32> to vector<1x16xf32>
    %26 = vector.broadcast %24 : vector<8x1xf32> to vector<8x16xf32>
    %27 = vector.broadcast %25 : vector<1x16xf32> to vector<8x16xf32>
    %28 = arith.addf %26, %27 : vector<8x16xf32>
    %c0_16 = arith.constant 0 : index
    %c1 = arith.constant 1 : index
    %29 = memref.load %arg7[%c0_16, %c1] : memref<1x32xf32, #tpu.memory_space<smem>>
    %30 = math.tanh %28 : vector<8x16xf32>
    %31 = vector.broadcast %29 : f32 to vector<8x16xf32>
    %32 = arith.mulf %31, %30 : vector<8x16xf32>
    %33 = arith.addf %23, %32 : vector<8x16xf32>
    %34 = vector.extract_strided_slice %5 {offsets = [0, 2], sizes = [8, 1], strides = [1, 1]} : vector<8x32xf32> to vector<8x1xf32>
    %35 = vector.extract_strided_slice %11 {offsets = [2, 0], sizes = [1, 16], strides = [1, 1]} : vector<32x16xf32> to vector<1x16xf32>
    %36 = vector.broadcast %34 : vector<8x1xf32> to vector<8x16xf32>
    %37 = vector.broadcast %35 : vector<1x16xf32> to vector<8x16xf32>
    %38 = arith.addf %36, %37 : vector<8x16xf32>
    %c0_17 = arith.constant 0 : index
    %c2 = arith.constant 2 : index
    %39 = memref.load %arg7[%c0_17, %c2] : memref<1x32xf32, #tpu.memory_space<smem>>
    %40 = math.tanh %38 : vector<8x16xf32>
    %41 = vector.broadcast %39 : f32 to vector<8x16xf32>
    %42 = arith.mulf %41, %40 : vector<8x16xf32>
    %43 = arith.addf %33, %42 : vector<8x16xf32>
    %44 = vector.extract_strided_slice %5 {offsets = [0, 3], sizes = [8, 1], strides = [1, 1]} : vector<8x32xf32> to vector<8x1xf32>
    %45 = vector.extract_strided_slice %11 {offsets = [3, 0], sizes = [1, 16], strides = [1, 1]} : vector<32x16xf32> to vector<1x16xf32>
    %46 = vector.broadcast %44 : vector<8x1xf32> to vector<8x16xf32>
    %47 = vector.broadcast %45 : vector<1x16xf32> to vector<8x16xf32>
    %48 = arith.addf %46, %47 : vector<8x16xf32>
    %c0_18 = arith.constant 0 : index
    %c3 = arith.constant 3 : index
    %49 = memref.load %arg7[%c0_18, %c3] : memref<1x32xf32, #tpu.memory_space<smem>>
    %50 = math.tanh %48 : vector<8x16xf32>
    %51 = vector.broadcast %49 : f32 to vector<8x16xf32>
    %52 = arith.mulf %51, %50 : vector<8x16xf32>
    %53 = arith.addf %43, %52 : vector<8x16xf32>
    %54 = vector.extract_strided_slice %5 {offsets = [0, 4], sizes = [8, 1], strides = [1, 1]} : vector<8x32xf32> to vector<8x1xf32>
    %55 = vector.extract_strided_slice %11 {offsets = [4, 0], sizes = [1, 16], strides = [1, 1]} : vector<32x16xf32> to vector<1x16xf32>
    %56 = vector.broadcast %54 : vector<8x1xf32> to vector<8x16xf32>
    %57 = vector.broadcast %55 : vector<1x16xf32> to vector<8x16xf32>
    %58 = arith.addf %56, %57 : vector<8x16xf32>
    %c0_19 = arith.constant 0 : index
    %c4 = arith.constant 4 : index
    %59 = memref.load %arg7[%c0_19, %c4] : memref<1x32xf32, #tpu.memory_space<smem>>
    %60 = math.tanh %58 : vector<8x16xf32>
    %61 = vector.broadcast %59 : f32 to vector<8x16xf32>
    %62 = arith.mulf %61, %60 : vector<8x16xf32>
    %63 = arith.addf %53, %62 : vector<8x16xf32>
    %64 = vector.extract_strided_slice %5 {offsets = [0, 5], sizes = [8, 1], strides = [1, 1]} : vector<8x32xf32> to vector<8x1xf32>
    %65 = vector.extract_strided_slice %11 {offsets = [5, 0], sizes = [1, 16], strides = [1, 1]} : vector<32x16xf32> to vector<1x16xf32>
    %66 = vector.broadcast %64 : vector<8x1xf32> to vector<8x16xf32>
    %67 = vector.broadcast %65 : vector<1x16xf32> to vector<8x16xf32>
    %68 = arith.addf %66, %67 : vector<8x16xf32>
    %c0_20 = arith.constant 0 : index
    %c5 = arith.constant 5 : index
    %69 = memref.load %arg7[%c0_20, %c5] : memref<1x32xf32, #tpu.memory_space<smem>>
    %70 = math.tanh %68 : vector<8x16xf32>
    %71 = vector.broadcast %69 : f32 to vector<8x16xf32>
    %72 = arith.mulf %71, %70 : vector<8x16xf32>
    %73 = arith.addf %63, %72 : vector<8x16xf32>
    %74 = vector.extract_strided_slice %5 {offsets = [0, 6], sizes = [8, 1], strides = [1, 1]} : vector<8x32xf32> to vector<8x1xf32>
    %75 = vector.extract_strided_slice %11 {offsets = [6, 0], sizes = [1, 16], strides = [1, 1]} : vector<32x16xf32> to vector<1x16xf32>
    %76 = vector.broadcast %74 : vector<8x1xf32> to vector<8x16xf32>
    %77 = vector.broadcast %75 : vector<1x16xf32> to vector<8x16xf32>
    %78 = arith.addf %76, %77 : vector<8x16xf32>
    %c0_21 = arith.constant 0 : index
    %c6 = arith.constant 6 : index
    %79 = memref.load %arg7[%c0_21, %c6] : memref<1x32xf32, #tpu.memory_space<smem>>
    %80 = math.tanh %78 : vector<8x16xf32>
    %81 = vector.broadcast %79 : f32 to vector<8x16xf32>
    %82 = arith.mulf %81, %80 : vector<8x16xf32>
    %83 = arith.addf %73, %82 : vector<8x16xf32>
    %84 = vector.extract_strided_slice %5 {offsets = [0, 7], sizes = [8, 1], strides = [1, 1]} : vector<8x32xf32> to vector<8x1xf32>
    %85 = vector.extract_strided_slice %11 {offsets = [7, 0], sizes = [1, 16], strides = [1, 1]} : vector<32x16xf32> to vector<1x16xf32>
    %86 = vector.broadcast %84 : vector<8x1xf32> to vector<8x16xf32>
    %87 = vector.broadcast %85 : vector<1x16xf32> to vector<8x16xf32>
    %88 = arith.addf %86, %87 : vector<8x16xf32>
    %c0_22 = arith.constant 0 : index
    %c7 = arith.constant 7 : index
    %89 = memref.load %arg7[%c0_22, %c7] : memref<1x32xf32, #tpu.memory_space<smem>>
    %90 = math.tanh %88 : vector<8x16xf32>
    %91 = vector.broadcast %89 : f32 to vector<8x16xf32>
    %92 = arith.mulf %91, %90 : vector<8x16xf32>
    %93 = arith.addf %83, %92 : vector<8x16xf32>
    %94 = vector.extract_strided_slice %5 {offsets = [0, 8], sizes = [8, 1], strides = [1, 1]} : vector<8x32xf32> to vector<8x1xf32>
    %95 = vector.extract_strided_slice %11 {offsets = [8, 0], sizes = [1, 16], strides = [1, 1]} : vector<32x16xf32> to vector<1x16xf32>
    %96 = vector.broadcast %94 : vector<8x1xf32> to vector<8x16xf32>
    %97 = vector.broadcast %95 : vector<1x16xf32> to vector<8x16xf32>
    %98 = arith.addf %96, %97 : vector<8x16xf32>
    %c0_23 = arith.constant 0 : index
    %c8 = arith.constant 8 : index
    %99 = memref.load %arg7[%c0_23, %c8] : memref<1x32xf32, #tpu.memory_space<smem>>
    %100 = math.tanh %98 : vector<8x16xf32>
    %101 = vector.broadcast %99 : f32 to vector<8x16xf32>
    %102 = arith.mulf %101, %100 : vector<8x16xf32>
    %103 = arith.addf %93, %102 : vector<8x16xf32>
    %104 = vector.extract_strided_slice %5 {offsets = [0, 9], sizes = [8, 1], strides = [1, 1]} : vector<8x32xf32> to vector<8x1xf32>
    %105 = vector.extract_strided_slice %11 {offsets = [9, 0], sizes = [1, 16], strides = [1, 1]} : vector<32x16xf32> to vector<1x16xf32>
    %106 = vector.broadcast %104 : vector<8x1xf32> to vector<8x16xf32>
    %107 = vector.broadcast %105 : vector<1x16xf32> to vector<8x16xf32>
    %108 = arith.addf %106, %107 : vector<8x16xf32>
    %c0_24 = arith.constant 0 : index
    %c9 = arith.constant 9 : index
    %109 = memref.load %arg7[%c0_24, %c9] : memref<1x32xf32, #tpu.memory_space<smem>>
    %110 = math.tanh %108 : vector<8x16xf32>
    %111 = vector.broadcast %109 : f32 to vector<8x16xf32>
    %112 = arith.mulf %111, %110 : vector<8x16xf32>
    %113 = arith.addf %103, %112 : vector<8x16xf32>
    %114 = vector.extract_strided_slice %5 {offsets = [0, 10], sizes = [8, 1], strides = [1, 1]} : vector<8x32xf32> to vector<8x1xf32>
    %115 = vector.extract_strided_slice %11 {offsets = [10, 0], sizes = [1, 16], strides = [1, 1]} : vector<32x16xf32> to vector<1x16xf32>
    %116 = vector.broadcast %114 : vector<8x1xf32> to vector<8x16xf32>
    %117 = vector.broadcast %115 : vector<1x16xf32> to vector<8x16xf32>
    %118 = arith.addf %116, %117 : vector<8x16xf32>
    %c0_25 = arith.constant 0 : index
    %c10 = arith.constant 10 : index
    %119 = memref.load %arg7[%c0_25, %c10] : memref<1x32xf32, #tpu.memory_space<smem>>
    %120 = math.tanh %118 : vector<8x16xf32>
    %121 = vector.broadcast %119 : f32 to vector<8x16xf32>
    %122 = arith.mulf %121, %120 : vector<8x16xf32>
    %123 = arith.addf %113, %122 : vector<8x16xf32>
    %124 = vector.extract_strided_slice %5 {offsets = [0, 11], sizes = [8, 1], strides = [1, 1]} : vector<8x32xf32> to vector<8x1xf32>
    %125 = vector.extract_strided_slice %11 {offsets = [11, 0], sizes = [1, 16], strides = [1, 1]} : vector<32x16xf32> to vector<1x16xf32>
    %126 = vector.broadcast %124 : vector<8x1xf32> to vector<8x16xf32>
    %127 = vector.broadcast %125 : vector<1x16xf32> to vector<8x16xf32>
    %128 = arith.addf %126, %127 : vector<8x16xf32>
    %c0_26 = arith.constant 0 : index
    %c11 = arith.constant 11 : index
    %129 = memref.load %arg7[%c0_26, %c11] : memref<1x32xf32, #tpu.memory_space<smem>>
    %130 = math.tanh %128 : vector<8x16xf32>
    %131 = vector.broadcast %129 : f32 to vector<8x16xf32>
    %132 = arith.mulf %131, %130 : vector<8x16xf32>
    %133 = arith.addf %123, %132 : vector<8x16xf32>
    %134 = vector.extract_strided_slice %5 {offsets = [0, 12], sizes = [8, 1], strides = [1, 1]} : vector<8x32xf32> to vector<8x1xf32>
    %135 = vector.extract_strided_slice %11 {offsets = [12, 0], sizes = [1, 16], strides = [1, 1]} : vector<32x16xf32> to vector<1x16xf32>
    %136 = vector.broadcast %134 : vector<8x1xf32> to vector<8x16xf32>
    %137 = vector.broadcast %135 : vector<1x16xf32> to vector<8x16xf32>
    %138 = arith.addf %136, %137 : vector<8x16xf32>
    %c0_27 = arith.constant 0 : index
    %c12 = arith.constant 12 : index
    %139 = memref.load %arg7[%c0_27, %c12] : memref<1x32xf32, #tpu.memory_space<smem>>
    %140 = math.tanh %138 : vector<8x16xf32>
    %141 = vector.broadcast %139 : f32 to vector<8x16xf32>
    %142 = arith.mulf %141, %140 : vector<8x16xf32>
    %143 = arith.addf %133, %142 : vector<8x16xf32>
    %144 = vector.extract_strided_slice %5 {offsets = [0, 13], sizes = [8, 1], strides = [1, 1]} : vector<8x32xf32> to vector<8x1xf32>
    %145 = vector.extract_strided_slice %11 {offsets = [13, 0], sizes = [1, 16], strides = [1, 1]} : vector<32x16xf32> to vector<1x16xf32>
    %146 = vector.broadcast %144 : vector<8x1xf32> to vector<8x16xf32>
    %147 = vector.broadcast %145 : vector<1x16xf32> to vector<8x16xf32>
    %148 = arith.addf %146, %147 : vector<8x16xf32>
    %c0_28 = arith.constant 0 : index
    %c13 = arith.constant 13 : index
    %149 = memref.load %arg7[%c0_28, %c13] : memref<1x32xf32, #tpu.memory_space<smem>>
    %150 = math.tanh %148 : vector<8x16xf32>
    %151 = vector.broadcast %149 : f32 to vector<8x16xf32>
    %152 = arith.mulf %151, %150 : vector<8x16xf32>
    %153 = arith.addf %143, %152 : vector<8x16xf32>
    %154 = vector.extract_strided_slice %5 {offsets = [0, 14], sizes = [8, 1], strides = [1, 1]} : vector<8x32xf32> to vector<8x1xf32>
    %155 = vector.extract_strided_slice %11 {offsets = [14, 0], sizes = [1, 16], strides = [1, 1]} : vector<32x16xf32> to vector<1x16xf32>
    %156 = vector.broadcast %154 : vector<8x1xf32> to vector<8x16xf32>
    %157 = vector.broadcast %155 : vector<1x16xf32> to vector<8x16xf32>
    %158 = arith.addf %156, %157 : vector<8x16xf32>
    %c0_29 = arith.constant 0 : index
    %c14 = arith.constant 14 : index
    %159 = memref.load %arg7[%c0_29, %c14] : memref<1x32xf32, #tpu.memory_space<smem>>
    %160 = math.tanh %158 : vector<8x16xf32>
    %161 = vector.broadcast %159 : f32 to vector<8x16xf32>
    %162 = arith.mulf %161, %160 : vector<8x16xf32>
    %163 = arith.addf %153, %162 : vector<8x16xf32>
    %164 = vector.extract_strided_slice %5 {offsets = [0, 15], sizes = [8, 1], strides = [1, 1]} : vector<8x32xf32> to vector<8x1xf32>
    %165 = vector.extract_strided_slice %11 {offsets = [15, 0], sizes = [1, 16], strides = [1, 1]} : vector<32x16xf32> to vector<1x16xf32>
    %166 = vector.broadcast %164 : vector<8x1xf32> to vector<8x16xf32>
    %167 = vector.broadcast %165 : vector<1x16xf32> to vector<8x16xf32>
    %168 = arith.addf %166, %167 : vector<8x16xf32>
    %c0_30 = arith.constant 0 : index
    %c15 = arith.constant 15 : index
    %169 = memref.load %arg7[%c0_30, %c15] : memref<1x32xf32, #tpu.memory_space<smem>>
    %170 = math.tanh %168 : vector<8x16xf32>
    %171 = vector.broadcast %169 : f32 to vector<8x16xf32>
    %172 = arith.mulf %171, %170 : vector<8x16xf32>
    %173 = arith.addf %163, %172 : vector<8x16xf32>
    %174 = vector.extract_strided_slice %5 {offsets = [0, 16], sizes = [8, 1], strides = [1, 1]} : vector<8x32xf32> to vector<8x1xf32>
    %175 = vector.extract_strided_slice %11 {offsets = [16, 0], sizes = [1, 16], strides = [1, 1]} : vector<32x16xf32> to vector<1x16xf32>
    %176 = vector.broadcast %174 : vector<8x1xf32> to vector<8x16xf32>
    %177 = vector.broadcast %175 : vector<1x16xf32> to vector<8x16xf32>
    %178 = arith.addf %176, %177 : vector<8x16xf32>
    %c0_31 = arith.constant 0 : index
    %c16 = arith.constant 16 : index
    %179 = memref.load %arg7[%c0_31, %c16] : memref<1x32xf32, #tpu.memory_space<smem>>
    %180 = math.tanh %178 : vector<8x16xf32>
    %181 = vector.broadcast %179 : f32 to vector<8x16xf32>
    %182 = arith.mulf %181, %180 : vector<8x16xf32>
    %183 = arith.addf %173, %182 : vector<8x16xf32>
    %184 = vector.extract_strided_slice %5 {offsets = [0, 17], sizes = [8, 1], strides = [1, 1]} : vector<8x32xf32> to vector<8x1xf32>
    %185 = vector.extract_strided_slice %11 {offsets = [17, 0], sizes = [1, 16], strides = [1, 1]} : vector<32x16xf32> to vector<1x16xf32>
    %186 = vector.broadcast %184 : vector<8x1xf32> to vector<8x16xf32>
    %187 = vector.broadcast %185 : vector<1x16xf32> to vector<8x16xf32>
    %188 = arith.addf %186, %187 : vector<8x16xf32>
    %c0_32 = arith.constant 0 : index
    %c17 = arith.constant 17 : index
    %189 = memref.load %arg7[%c0_32, %c17] : memref<1x32xf32, #tpu.memory_space<smem>>
    %190 = math.tanh %188 : vector<8x16xf32>
    %191 = vector.broadcast %189 : f32 to vector<8x16xf32>
    %192 = arith.mulf %191, %190 : vector<8x16xf32>
    %193 = arith.addf %183, %192 : vector<8x16xf32>
    %194 = vector.extract_strided_slice %5 {offsets = [0, 18], sizes = [8, 1], strides = [1, 1]} : vector<8x32xf32> to vector<8x1xf32>
    %195 = vector.extract_strided_slice %11 {offsets = [18, 0], sizes = [1, 16], strides = [1, 1]} : vector<32x16xf32> to vector<1x16xf32>
    %196 = vector.broadcast %194 : vector<8x1xf32> to vector<8x16xf32>
    %197 = vector.broadcast %195 : vector<1x16xf32> to vector<8x16xf32>
    %198 = arith.addf %196, %197 : vector<8x16xf32>
    %c0_33 = arith.constant 0 : index
    %c18 = arith.constant 18 : index
    %199 = memref.load %arg7[%c0_33, %c18] : memref<1x32xf32, #tpu.memory_space<smem>>
    %200 = math.tanh %198 : vector<8x16xf32>
    %201 = vector.broadcast %199 : f32 to vector<8x16xf32>
    %202 = arith.mulf %201, %200 : vector<8x16xf32>
    %203 = arith.addf %193, %202 : vector<8x16xf32>
    %204 = vector.extract_strided_slice %5 {offsets = [0, 19], sizes = [8, 1], strides = [1, 1]} : vector<8x32xf32> to vector<8x1xf32>
    %205 = vector.extract_strided_slice %11 {offsets = [19, 0], sizes = [1, 16], strides = [1, 1]} : vector<32x16xf32> to vector<1x16xf32>
    %206 = vector.broadcast %204 : vector<8x1xf32> to vector<8x16xf32>
    %207 = vector.broadcast %205 : vector<1x16xf32> to vector<8x16xf32>
    %208 = arith.addf %206, %207 : vector<8x16xf32>
    %c0_34 = arith.constant 0 : index
    %c19 = arith.constant 19 : index
    %209 = memref.load %arg7[%c0_34, %c19] : memref<1x32xf32, #tpu.memory_space<smem>>
    %210 = math.tanh %208 : vector<8x16xf32>
    %211 = vector.broadcast %209 : f32 to vector<8x16xf32>
    %212 = arith.mulf %211, %210 : vector<8x16xf32>
    %213 = arith.addf %203, %212 : vector<8x16xf32>
    %214 = vector.extract_strided_slice %5 {offsets = [0, 20], sizes = [8, 1], strides = [1, 1]} : vector<8x32xf32> to vector<8x1xf32>
    %215 = vector.extract_strided_slice %11 {offsets = [20, 0], sizes = [1, 16], strides = [1, 1]} : vector<32x16xf32> to vector<1x16xf32>
    %216 = vector.broadcast %214 : vector<8x1xf32> to vector<8x16xf32>
    %217 = vector.broadcast %215 : vector<1x16xf32> to vector<8x16xf32>
    %218 = arith.addf %216, %217 : vector<8x16xf32>
    %c0_35 = arith.constant 0 : index
    %c20 = arith.constant 20 : index
    %219 = memref.load %arg7[%c0_35, %c20] : memref<1x32xf32, #tpu.memory_space<smem>>
    %220 = math.tanh %218 : vector<8x16xf32>
    %221 = vector.broadcast %219 : f32 to vector<8x16xf32>
    %222 = arith.mulf %221, %220 : vector<8x16xf32>
    %223 = arith.addf %213, %222 : vector<8x16xf32>
    %224 = vector.extract_strided_slice %5 {offsets = [0, 21], sizes = [8, 1], strides = [1, 1]} : vector<8x32xf32> to vector<8x1xf32>
    %225 = vector.extract_strided_slice %11 {offsets = [21, 0], sizes = [1, 16], strides = [1, 1]} : vector<32x16xf32> to vector<1x16xf32>
    %226 = vector.broadcast %224 : vector<8x1xf32> to vector<8x16xf32>
    %227 = vector.broadcast %225 : vector<1x16xf32> to vector<8x16xf32>
    %228 = arith.addf %226, %227 : vector<8x16xf32>
    %c0_36 = arith.constant 0 : index
    %c21 = arith.constant 21 : index
    %229 = memref.load %arg7[%c0_36, %c21] : memref<1x32xf32, #tpu.memory_space<smem>>
    %230 = math.tanh %228 : vector<8x16xf32>
    %231 = vector.broadcast %229 : f32 to vector<8x16xf32>
    %232 = arith.mulf %231, %230 : vector<8x16xf32>
    %233 = arith.addf %223, %232 : vector<8x16xf32>
    %234 = vector.extract_strided_slice %5 {offsets = [0, 22], sizes = [8, 1], strides = [1, 1]} : vector<8x32xf32> to vector<8x1xf32>
    %235 = vector.extract_strided_slice %11 {offsets = [22, 0], sizes = [1, 16], strides = [1, 1]} : vector<32x16xf32> to vector<1x16xf32>
    %236 = vector.broadcast %234 : vector<8x1xf32> to vector<8x16xf32>
    %237 = vector.broadcast %235 : vector<1x16xf32> to vector<8x16xf32>
    %238 = arith.addf %236, %237 : vector<8x16xf32>
    %c0_37 = arith.constant 0 : index
    %c22 = arith.constant 22 : index
    %239 = memref.load %arg7[%c0_37, %c22] : memref<1x32xf32, #tpu.memory_space<smem>>
    %240 = math.tanh %238 : vector<8x16xf32>
    %241 = vector.broadcast %239 : f32 to vector<8x16xf32>
    %242 = arith.mulf %241, %240 : vector<8x16xf32>
    %243 = arith.addf %233, %242 : vector<8x16xf32>
    %244 = vector.extract_strided_slice %5 {offsets = [0, 23], sizes = [8, 1], strides = [1, 1]} : vector<8x32xf32> to vector<8x1xf32>
    %245 = vector.extract_strided_slice %11 {offsets = [23, 0], sizes = [1, 16], strides = [1, 1]} : vector<32x16xf32> to vector<1x16xf32>
    %246 = vector.broadcast %244 : vector<8x1xf32> to vector<8x16xf32>
    %247 = vector.broadcast %245 : vector<1x16xf32> to vector<8x16xf32>
    %248 = arith.addf %246, %247 : vector<8x16xf32>
    %c0_38 = arith.constant 0 : index
    %c23 = arith.constant 23 : index
    %249 = memref.load %arg7[%c0_38, %c23] : memref<1x32xf32, #tpu.memory_space<smem>>
    %250 = math.tanh %248 : vector<8x16xf32>
    %251 = vector.broadcast %249 : f32 to vector<8x16xf32>
    %252 = arith.mulf %251, %250 : vector<8x16xf32>
    %253 = arith.addf %243, %252 : vector<8x16xf32>
    %254 = vector.extract_strided_slice %5 {offsets = [0, 24], sizes = [8, 1], strides = [1, 1]} : vector<8x32xf32> to vector<8x1xf32>
    %255 = vector.extract_strided_slice %11 {offsets = [24, 0], sizes = [1, 16], strides = [1, 1]} : vector<32x16xf32> to vector<1x16xf32>
    %256 = vector.broadcast %254 : vector<8x1xf32> to vector<8x16xf32>
    %257 = vector.broadcast %255 : vector<1x16xf32> to vector<8x16xf32>
    %258 = arith.addf %256, %257 : vector<8x16xf32>
    %c0_39 = arith.constant 0 : index
    %c24 = arith.constant 24 : index
    %259 = memref.load %arg7[%c0_39, %c24] : memref<1x32xf32, #tpu.memory_space<smem>>
    %260 = math.tanh %258 : vector<8x16xf32>
    %261 = vector.broadcast %259 : f32 to vector<8x16xf32>
    %262 = arith.mulf %261, %260 : vector<8x16xf32>
    %263 = arith.addf %253, %262 : vector<8x16xf32>
    %264 = vector.extract_strided_slice %5 {offsets = [0, 25], sizes = [8, 1], strides = [1, 1]} : vector<8x32xf32> to vector<8x1xf32>
    %265 = vector.extract_strided_slice %11 {offsets = [25, 0], sizes = [1, 16], strides = [1, 1]} : vector<32x16xf32> to vector<1x16xf32>
    %266 = vector.broadcast %264 : vector<8x1xf32> to vector<8x16xf32>
    %267 = vector.broadcast %265 : vector<1x16xf32> to vector<8x16xf32>
    %268 = arith.addf %266, %267 : vector<8x16xf32>
    %c0_40 = arith.constant 0 : index
    %c25 = arith.constant 25 : index
    %269 = memref.load %arg7[%c0_40, %c25] : memref<1x32xf32, #tpu.memory_space<smem>>
    %270 = math.tanh %268 : vector<8x16xf32>
    %271 = vector.broadcast %269 : f32 to vector<8x16xf32>
    %272 = arith.mulf %271, %270 : vector<8x16xf32>
    %273 = arith.addf %263, %272 : vector<8x16xf32>
    %274 = vector.extract_strided_slice %5 {offsets = [0, 26], sizes = [8, 1], strides = [1, 1]} : vector<8x32xf32> to vector<8x1xf32>
    %275 = vector.extract_strided_slice %11 {offsets = [26, 0], sizes = [1, 16], strides = [1, 1]} : vector<32x16xf32> to vector<1x16xf32>
    %276 = vector.broadcast %274 : vector<8x1xf32> to vector<8x16xf32>
    %277 = vector.broadcast %275 : vector<1x16xf32> to vector<8x16xf32>
    %278 = arith.addf %276, %277 : vector<8x16xf32>
    %c0_41 = arith.constant 0 : index
    %c26 = arith.constant 26 : index
    %279 = memref.load %arg7[%c0_41, %c26] : memref<1x32xf32, #tpu.memory_space<smem>>
    %280 = math.tanh %278 : vector<8x16xf32>
    %281 = vector.broadcast %279 : f32 to vector<8x16xf32>
    %282 = arith.mulf %281, %280 : vector<8x16xf32>
    %283 = arith.addf %273, %282 : vector<8x16xf32>
    %284 = vector.extract_strided_slice %5 {offsets = [0, 27], sizes = [8, 1], strides = [1, 1]} : vector<8x32xf32> to vector<8x1xf32>
    %285 = vector.extract_strided_slice %11 {offsets = [27, 0], sizes = [1, 16], strides = [1, 1]} : vector<32x16xf32> to vector<1x16xf32>
    %286 = vector.broadcast %284 : vector<8x1xf32> to vector<8x16xf32>
    %287 = vector.broadcast %285 : vector<1x16xf32> to vector<8x16xf32>
    %288 = arith.addf %286, %287 : vector<8x16xf32>
    %c0_42 = arith.constant 0 : index
    %c27 = arith.constant 27 : index
    %289 = memref.load %arg7[%c0_42, %c27] : memref<1x32xf32, #tpu.memory_space<smem>>
    %290 = math.tanh %288 : vector<8x16xf32>
    %291 = vector.broadcast %289 : f32 to vector<8x16xf32>
    %292 = arith.mulf %291, %290 : vector<8x16xf32>
    %293 = arith.addf %283, %292 : vector<8x16xf32>
    %294 = vector.extract_strided_slice %5 {offsets = [0, 28], sizes = [8, 1], strides = [1, 1]} : vector<8x32xf32> to vector<8x1xf32>
    %295 = vector.extract_strided_slice %11 {offsets = [28, 0], sizes = [1, 16], strides = [1, 1]} : vector<32x16xf32> to vector<1x16xf32>
    %296 = vector.broadcast %294 : vector<8x1xf32> to vector<8x16xf32>
    %297 = vector.broadcast %295 : vector<1x16xf32> to vector<8x16xf32>
    %298 = arith.addf %296, %297 : vector<8x16xf32>
    %c0_43 = arith.constant 0 : index
    %c28 = arith.constant 28 : index
    %299 = memref.load %arg7[%c0_43, %c28] : memref<1x32xf32, #tpu.memory_space<smem>>
    %300 = math.tanh %298 : vector<8x16xf32>
    %301 = vector.broadcast %299 : f32 to vector<8x16xf32>
    %302 = arith.mulf %301, %300 : vector<8x16xf32>
    %303 = arith.addf %293, %302 : vector<8x16xf32>
    %304 = vector.extract_strided_slice %5 {offsets = [0, 29], sizes = [8, 1], strides = [1, 1]} : vector<8x32xf32> to vector<8x1xf32>
    %305 = vector.extract_strided_slice %11 {offsets = [29, 0], sizes = [1, 16], strides = [1, 1]} : vector<32x16xf32> to vector<1x16xf32>
    %306 = vector.broadcast %304 : vector<8x1xf32> to vector<8x16xf32>
    %307 = vector.broadcast %305 : vector<1x16xf32> to vector<8x16xf32>
    %308 = arith.addf %306, %307 : vector<8x16xf32>
    %c0_44 = arith.constant 0 : index
    %c29 = arith.constant 29 : index
    %309 = memref.load %arg7[%c0_44, %c29] : memref<1x32xf32, #tpu.memory_space<smem>>
    %310 = math.tanh %308 : vector<8x16xf32>
    %311 = vector.broadcast %309 : f32 to vector<8x16xf32>
    %312 = arith.mulf %311, %310 : vector<8x16xf32>
    %313 = arith.addf %303, %312 : vector<8x16xf32>
    %314 = vector.extract_strided_slice %5 {offsets = [0, 30], sizes = [8, 1], strides = [1, 1]} : vector<8x32xf32> to vector<8x1xf32>
    %315 = vector.extract_strided_slice %11 {offsets = [30, 0], sizes = [1, 16], strides = [1, 1]} : vector<32x16xf32> to vector<1x16xf32>
    %316 = vector.broadcast %314 : vector<8x1xf32> to vector<8x16xf32>
    %317 = vector.broadcast %315 : vector<1x16xf32> to vector<8x16xf32>
    %318 = arith.addf %316, %317 : vector<8x16xf32>
    %c0_45 = arith.constant 0 : index
    %c30 = arith.constant 30 : index
    %319 = memref.load %arg7[%c0_45, %c30] : memref<1x32xf32, #tpu.memory_space<smem>>
    %320 = math.tanh %318 : vector<8x16xf32>
    %321 = vector.broadcast %319 : f32 to vector<8x16xf32>
    %322 = arith.mulf %321, %320 : vector<8x16xf32>
    %323 = arith.addf %313, %322 : vector<8x16xf32>
    %324 = vector.extract_strided_slice %5 {offsets = [0, 31], sizes = [8, 1], strides = [1, 1]} : vector<8x32xf32> to vector<8x1xf32>
    %325 = vector.extract_strided_slice %11 {offsets = [31, 0], sizes = [1, 16], strides = [1, 1]} : vector<32x16xf32> to vector<1x16xf32>
    %326 = vector.broadcast %324 : vector<8x1xf32> to vector<8x16xf32>
    %327 = vector.broadcast %325 : vector<1x16xf32> to vector<8x16xf32>
    %328 = arith.addf %326, %327 : vector<8x16xf32>
    %c0_46 = arith.constant 0 : index
    %c31 = arith.constant 31 : index
    %329 = memref.load %arg7[%c0_46, %c31] : memref<1x32xf32, #tpu.memory_space<smem>>
    %330 = math.tanh %328 : vector<8x16xf32>
    %331 = vector.broadcast %329 : f32 to vector<8x16xf32>
    %332 = arith.mulf %331, %330 : vector<8x16xf32>
    %333 = arith.addf %323, %332 : vector<8x16xf32>
    %c0_47 = arith.constant 0 : index
    %c0_48 = arith.constant 0 : index
    %c0_49 = arith.constant 0 : index
    %334 = vector.load %arg9[%c0_47, %c0_48, %c0_49] : memref<1x8x16xf32, #tpu.memory_space<vmem>>, vector<1x8x16xf32>
    %335 = vector.shape_cast %334 : vector<1x8x16xf32> to vector<8x16xf32>
    %336 = vector.shape_cast %333 : vector<8x16xf32> to vector<1x8x16xf32>
    tpu.vector_store %arg9[%c0_47, %c0_48, %c0_49], %336 {strides = array<i32>} : memref<1x8x16xf32, #tpu.memory_space<vmem>>, vector<1x8x16xf32>,
    return
  }
  func.func @transform_0(%arg0: i32, %arg1: i32) -> (i32, i32, i32) {
    %c0_i32 = arith.constant 0 : i32
    %c0_i32_0 = arith.constant 0 : i32
    return %arg0, %arg1, %c0_i32 : i32, i32, i32
  }
  func.func @transform_1(%arg0: i32, %arg1: i32) -> (i32, i32, i32) {
    %c0_i32 = arith.constant 0 : i32
    %c0_i32_0 = arith.constant 0 : i32
    %c0_i32_1 = arith.constant 0 : i32
    return %arg0, %c0_i32, %c0_i32_0 : i32, i32, i32
  }
  func.func @transform_2(%arg0: i32, %arg1: i32) -> (i32, i32) {
    %c0_i32 = arith.constant 0 : i32
    %c0_i32_0 = arith.constant 0 : i32
    %c0_i32_1 = arith.constant 0 : i32
    return %c0_i32, %c0_i32_0 : i32, i32
  }
  func.func @transform_3(%arg0: i32, %arg1: i32) -> (i32, i32) {
    %c0_i32 = arith.constant 0 : i32
    %c0_i32_0 = arith.constant 0 : i32
    %c0_i32_1 = arith.constant 0 : i32
    return %c0_i32, %c0_i32_0 : i32, i32
  }
  func.func @transform_4(%arg0: i32, %arg1: i32) -> (i32, i32) {
    %c0_i32 = arith.constant 0 : i32
    %c0_i32_0 = arith.constant 0 : i32
    %c0_i32_1 = arith.constant 0 : i32
    return %c0_i32, %c0_i32_0 : i32, i32
  }
  func.func @transform_5(%arg0: i32, %arg1: i32) -> (i32, i32) {
    %c0_i32 = arith.constant 0 : i32
    %c0_i32_0 = arith.constant 0 : i32
    %c0_i32_1 = arith.constant 0 : i32
    return %c0_i32, %c0_i32_0 : i32, i32
  }
  func.func @transform_6(%arg0: i32, %arg1: i32) -> (i32, i32) {
    %c0_i32 = arith.constant 0 : i32
    %c0_i32_0 = arith.constant 0 : i32
    %c0_i32_1 = arith.constant 0 : i32
    return %c0_i32, %c0_i32_0 : i32, i32
  }
  func.func @transform_7(%arg0: i32, %arg1: i32) -> (i32, i32, i32) {
    %c0_i32 = arith.constant 0 : i32
    %c0_i32_0 = arith.constant 0 : i32
    return %arg0, %arg1, %c0_i32 : i32, i32, i32
  }
}

</mosaic_0001>

<bundles_post_ra>
// kernel: tpu_custom_call.1
= control target key start
LH: loop header
LB: loop body
LE: loop exit
PB: predicated region body
PF: predicated region fallthrough
CT: control target
= control target key end

     0   :  { %s2400_s0 = inlined_call_operand.hbm [shape: bf16[2,8,32], index: 0, kind: input, shape index: {}]   ;;  %s2401_s1 = inlined_call_operand.hbm [shape: bf16[2,16,32], index: 1, kind: input, shape index: {}]   ;;  %s2402_s2 = inlined_call_operand.hbm [shape: bf16[32,32], index: 2, kind: input, shape index: {}]   ;;  %s2403_s3 = inlined_call_operand.hbm [shape: bf16[32,32], index: 3, kind: input, shape index: {}]   ;;  %s2404_s4 = inlined_call_operand.vmem [shape: f32[1,32], index: 4, kind: input, shape index: {}]   ;;  %s2405_s5 = inlined_call_operand.vmem [shape: f32[1,32], index: 5, kind: input, shape index: {}]   ;;  %s2406_s6 = inlined_call_operand.<no memory space> [shape: f32[1,1], index: 6, kind: input, shape index: {}]   ;;  %s2407_s7 = inlined_call_operand.hbm [shape: f32[2,8,16], index: 7, kind: output, shape index: {}]  }
   0x1   :  { %2414 = sst [smem:[#allocation21_spill]] %s2400_s0 }
   0x2   :  { %2415 = sst [smem:[#allocation22_spill]] %s2402_s2 }
   0x3   :  { %2416 = sst [smem:[#allocation23_spill]] %s2405_s5 }
   0x4   :  { %12 = sst [smem:[#allocation2]] %s2406_s6 }
   0x5   :  { %13 = vsyncpa [#allocation4], 0 }
   0x6   :  { %15 = vsyncpa [#allocation4 + $0x1], 0 }
   0x7   :  { %16 = vsyncpa [#allocation8], 0 }
   0x8   :  { %18 = vsyncpa [#allocation8 + $0x1], 0 }
   0x9   :  { %19 = vsyncpa [#allocation11], 0 }
   0xa   :  { %20 = vsyncpa [#allocation6], 0 }
   0xb   :  { %21 = vsyncpa [#allocation5], 0 }
   0xc   :  { %23 = vsyncpa [#allocation5 + $0x1], 0  ;;  %s1801_s26 = smov 0   ;;  %s1803_s27 = smov 0  }
   0xd   :  { %s1805_s28 = smov 0   ;;  %s1807_s29 = smov 0  }
   0xe   :  { %s1809_s30 = smov 0   ;;  %s1811_s8 = smov 0  }
   0xf LB: > { %s1832_s6 = sadd.s32 4294967295, %s1714_s8   ;;  %s1166_s9 = sadd.s32 4294967294, %s1714_s8   ;;  %s1714_s8 = sphi %s1811_s8, %s29_s8   ;;  %s1710_s30 = sphi %s1809_s30, %s2447_s30   ;;  %s1706_s29 = sphi %s1807_s29, %s2446_s29   ;;  %s1702_s28 = sphi %s1805_s28, %s2445_s28   ;;  %s1698_s27 = sphi %s1803_s27, %s2444_s27   ;;  %s1694_s26 = sphi %s1801_s26, %s2443_s26  }
  0x10   : > { %p63_p0 = scmp.ne.s32.totalorder %s1698_s27, %s1694_s26  ;;  %p2408_p1 = scmp.eq.s32.totalorder %s1832_s6, 0 }
  0x11   : > { %p226_p3 = scmp.eq.s32.totalorder %s1166_s9, 1  ;;  %p1167_p5 = scmp.ge.s32.totalorder %s1714_s8, 1 }
  0x12   : > { %p1841_p4 = por %p2408_p1, %p63_p0  ;;  %p233_p7 = scmp.lt.s32.totalorder %s1714_s8, 3 }
  0x13   : > { %p1846_p6 = por %p226_p3, %p63_p0  ;;  %s1716_s13 = smov [#allocation9]  }
  0x14   : > { %s2417_s10 = scalar_select %p1841_p4, 1, 0 }
  0x15   : > { %s2418_s11 = scalar_select %p1846_p6, 1, 0 }
  0x16   : > { %p1851_p8 = pnand %p1167_p5, %p233_p7  ;;  %s245_s14 = sshll.u32 %s1716_s13, 4  ;;  %s1855_s14 = int_to_ptr.vmem [resolvable:$true] %s245_s14 }
  0x17   : > { %2419 = sst [smem:[#allocation20_spill]] %s2418_s11  ;;  %s1717_s16 = smov [#allocation10]  }
  0x18   : > { %p1268_p9 = pneg %p1851_p8  ;;  %s258_s17 = sshll.u32 %s1717_s16, 4  ;;  %s1866_s17 = int_to_ptr.vmem [resolvable:$true] %s258_s17 }
  0x19   : > { %s2422_s5 = sld [smem:[#allocation23_spill]]  ;;  %s2423_s2 = sld [smem:[#allocation22_spill]] }
  0x1a   : > { %p1862_p11 = pnand %p1268_p9, %p2408_p1 }
  0x1c   : > { %p1881_p13 = pneg %p1862_p11 }
  0x1f   : > { %s275_s20 = sshll.u32 %s2422_s5, 4  ;;  %s1485_s23 = scalar_lea.hbm %s2423_s2, 256  ;;  %s1871_s20 = int_to_ptr.vmem [resolvable:$true] %s275_s20 }
  0x20   : > { %p1486_p12 = scmp.ne.s32.totalorder %s2423_s2, %s1485_s23  ;;  %p1492_p5 = scmp.lt.u32.totalorder %s1485_s23, %s2423_s2 }
  0x22   : > { %p1488_p0 = pnand %p1881_p13, %p1486_p12 }
  0x24   : > { %p1489_p3 = pneg %p1488_p0 }
  0x26   : > { %p1494_p7 = pnand %p1492_p5, %p1489_p3 }
  0x28   : > { %1497 = shalt.err (!%p1494_p7)
}
  0x29   : > { %s1498_s18 = scalar_lea.vmem %s1855_s14, 256  ;;  %p1506_p2 = scmp.lt.s32.totalorder %s1855_s14, %s1855_s14 }
  0x2a   : > { %p1499_p9 = scmp.ne.s32.totalorder %s1855_s14, %s1498_s18  ;;  %p1507_p6 = scmp.lt.s32.totalorder %s1498_s18, %s1498_s18 }
  0x2c   : > { %p1501_p10 = pnand %p1499_p9, %p1881_p13  ;;  %p1508_p12 = por %p1507_p6, %p1506_p2 }
  0x2e   : > { %p1502_p1 = pneg %p1501_p10 }
  0x30   : > { %p1509_p0 = pnand %p1508_p12, %p1502_p1 }
  0x32   : > { %1512 = shalt.err (!%p1509_p0)
}
  0x33   : > { %s2410_s19 = smov 64   ;;  %s2411_s21 = smov 4  }
  0x34   : > { %1271 = dma.hbm_to_vmem [thread:$0]  (!%p1862_p11), %s2423_s2, 256, %s1855_s14, [#allocation8], %s2410_s19, %s2410_s19, %s2411_s21  }
  0x35   : > { %s1513_s13 = scalar_lea.hbm %s2403_s3, 256 }
  0x36   : > { %p1514_p1 = scmp.ne.s32.totalorder %s2403_s3, %s1513_s13  ;;  %p1520_p10 = scmp.lt.u32.totalorder %s1513_s13, %s2403_s3 }
  0x38   : > { %p1516_p2 = pnand %p1514_p1, %p1881_p13 }
  0x3a   : > { %p1517_p6 = pneg %p1516_p2 }
  0x3c   : > { %p1522_p3 = pnand %p1520_p10, %p1517_p6 }
  0x3e   : > { %1525 = shalt.err (!%p1522_p3)
}
  0x3f   : > { %s1526_s14 = scalar_lea.vmem %s1866_s17, 256  ;;  %p1534_p12 = scmp.lt.s32.totalorder %s1866_s17, %s1866_s17 }
  0x40   : > { %p1527_p5 = scmp.ne.s32.totalorder %s1866_s17, %s1526_s14  ;;  %p1535_p0 = scmp.lt.s32.totalorder %s1526_s14, %s1526_s14 }
  0x42   : > { %p1529_p7 = pnand %p1527_p5, %p1881_p13  ;;  %p1536_p1 = por %p1535_p0, %p1534_p12 }
  0x44   : > { %p1530_p9 = pneg %p1529_p7 }
  0x46   : > { %p1537_p2 = pnand %p1536_p1, %p1530_p9 }
  0x48   : > { %1540 = shalt.err (!%p1537_p2)
}
  0x49   : > { %1274 = dma.hbm_to_vmem [thread:$0]  (!%p1862_p11), %s2403_s3, 256, %s1866_s17, [#allocation11], %s2410_s19, %s2410_s19, %s2411_s21  }
  0x4a   : > { %s1541_s22 = scalar_lea.vmem %s1871_s20, 16  ;;  %p1549_p5 = scmp.lt.s32.totalorder %s1871_s20, %s1871_s20 }
  0x4b   : > { %p1542_p6 = scmp.ne.s32.totalorder %s1871_s20, %s1541_s22  ;;  %p1550_p7 = scmp.lt.s32.totalorder %s1541_s22, %s1541_s22 }
  0x4d   : > { %p1544_p10 = pnand %p1542_p6, %p1881_p13  ;;  %p1551_p9 = por %p1550_p7, %p1549_p5 }
  0x4f   : > { %p1545_p3 = pneg %p1544_p10 }
  0x51   : > { %p1552_p12 = pnand %p1551_p9, %p1545_p3 }
  0x53   : > { %1555 = shalt.err (!%p1552_p12)
}
  0x54   : > { %s1720_s23 = smov [#allocation12]   ;;  %s50_s17 = sadd.s32 1, %s1702_s28 }
  0x55   : > { %1277 = dma.vmem_to_smem (!%p1862_p11), %s1871_s20, 16, %s1720_s23, [#allocation6]  }
  0x56   : > { %s41_s9 = sadd.s32 1, %s1710_s30  ;;  %p57_p13 = scmp.ne.s32.totalorder %s1702_s28, %s1698_s27 }
  0x57   : > { %p43_p0 = scmp.ge.s32.totalorder %s41_s9, 2  ;;  %p58_p1 = scmp.eq.s32.totalorder %s1714_s8, 0 }
  0x58   : > { %p2425_p2 = scmp.eq.s32.totalorder %s1832_s6, 1  ;;  %p1292_p10 = scmp.lt.s32.totalorder %s1714_s8, 2 }
  0x59   : > { %s2449_s9 = smov (%p43_p0, %s41_s9), 0  ;;  %p59_p3 = por %p58_p1, %p57_p13 }
  0x5a   : > { %p1947_p6 = por %p2425_p2, %p57_p13  ;;  %s1955_s24 = sand.u32 1, %s1702_s28  }
  0x5b   : > { %s45_s20 = ssub.s32 %s1710_s30, %s2449_s9  ;;  %s1172_s25 = sshll.u32 %s1955_s24, 2 }
  0x5c   : > { %s2426_s15 = scalar_select %p1947_p6, 1, 0 }
  0x5d   : > { %p48_p11 = scmp.eq.s32.totalorder %s45_s20, 0  ;;  %s1173_s13 = sshll.u32 %s1710_s30, 6 }
  0x5e   : > { %s2427_s0 = sld [smem:[#allocation21_spill]]  ;;  %s293_s11 = scalar_lea.vmem [#allocation3], %s1172_s25 }
  0x5f   : > { %s1962_s16 = scalar_select %p48_p11, %s1702_s28, %s50_s17  }
  0x60   : > { %s301_s22 = sshll.u32 %s293_s11, 4  ;;  %p1973_p5 = pnand %p1292_p10, %p59_p3  ;;  %s1969_s22 = int_to_ptr.vmem [resolvable:$true] %s301_s22 }
  0x61   : > { %s1174_s17 = sshll.u32 %s1955_s24, 3  ;;  %s290_s18 = scalar_lea.sflag [#allocation4], %s1955_s24 }
  0x62   : > { %p1558_p9 = pneg %p1973_p5 }
  0x64   : > { %s1967_s5 = scalar_lea.hbm %s2427_s0, %s1173_s13  ;;  %s1561_s11 = scalar_lea.hbm %s2427_s0, 128 }
  0x65   : > { %s1556_s13 = scalar_lea.hbm %s1967_s5, 64  ;;  %p1562_p0 = scmp.lt.u32.totalorder %s1967_s5, %s2427_s0 }
  0x66   : > { %p1557_p7 = scmp.ne.s32.totalorder %s1967_s5, %s1556_s13  ;;  %p1563_p1 = scmp.lt.u32.totalorder %s1561_s11, %s1556_s13 }
  0x67   : > { %p1565_p10 = scmp.lt.u32.totalorder %s1556_s13, %s1967_s5 }
  0x68   : > { %p1559_p12 = pnand %p1558_p9, %p1557_p7  ;;  %p1564_p2 = por %p1563_p1, %p1562_p0 }
  0x6a   : > { %p1560_p13 = pneg %p1559_p12  ;;  %p1566_p3 = por %p1565_p10, %p1564_p2 }
  0x6c   : > { %p1567_p11 = pnand %p1566_p3, %p1560_p13 }
  0x6e   : > { %1570 = shalt.err (!%p1567_p11)
}
  0x6f   : > { %s1571_s20 = scalar_lea.vmem %s1969_s22, 64  ;;  %s1721_s25 = smov [#allocation3]  }
  0x70   : > { %p1572_p7 = scmp.ne.s32.totalorder %s1969_s22, %s1571_s20  ;;  %s1576_s14 = sshll.u32 %s1721_s25, 4  ;;  %s1577_s14 = int_to_ptr.vmem [resolvable:$false] %s1576_s14 }
  0x71   : > { %s1578_s19 = scalar_lea.vmem %s1577_s14, 128  ;;  %p1579_p4 = scmp.lt.s32.totalorder %s1969_s22, %s1577_s14 }
  0x72   : > { %p1574_p12 = pnand %p1572_p7, %p1558_p9  ;;  %p1580_p0 = scmp.lt.s32.totalorder %s1578_s19, %s1571_s20 }
  0x74   : > { %p1575_p6 = pneg %p1574_p12  ;;  %p1581_p1 = por %p1580_p0, %p1579_p4 }
  0x76   : > { %p1582_p2 = pnand %p1581_p1, %p1575_p6 }
  0x78   : > { %1585 = shalt.err (!%p1582_p2)
}
  0x79   : > { %1281 = dma.hbm_to_vmem [thread:$0]  (!%p1973_p5), %s1967_s5, 64, %s1969_s22, %s290_s18  }
  0x7a   : > { %s312_s21 = scalar_lea.vmem [#allocation7], %s1174_s17  ;;  %s308_s11 = sand.u32 1, %s1714_s8  }
  0x7b   : > { %s319_s13 = sshll.u32 %s312_s21, 4  ;;  %s2429_s25 = sshll.u32 %s1710_s30, 7  ;;  %s2008_s13 = int_to_ptr.vmem [resolvable:$true] %s319_s13 }
  0x7c   : > { %s2015_s19 = scalar_lea.hbm %s2401_s1, %s2429_s25  ;;  %s2017_s0 = scalar_lea.sflag [#allocation8], %s308_s11 }
  0x7d   : > { %s1586_s2 = scalar_lea.hbm %s2015_s19, 128  ;;  %s1591_s22 = scalar_lea.hbm %s2401_s1, 256 }
  0x7e   : > { %p1587_p4 = scmp.ne.s32.totalorder %s2015_s19, %s1586_s2  ;;  %p1592_p10 = scmp.lt.u32.totalorder %s2015_s19, %s2401_s1 }
  0x7f   : > { %p1593_p3 = scmp.lt.u32.totalorder %s1591_s22, %s1586_s2  ;;  %p1595_p7 = scmp.lt.u32.totalorder %s1586_s2, %s2015_s19 }
  0x80   : > { %p1589_p6 = pnand %p1587_p4, %p1558_p9 }
  0x81   : > { %p1594_p11 = por %p1593_p3, %p1592_p10 }
  0x82   : > { %p1590_p13 = pneg %p1589_p6 }
  0x83   : > { %p1596_p12 = por %p1595_p7, %p1594_p11 }
  0x85   : > { %p1597_p0 = pnand %p1596_p12, %p1590_p13 }
  0x87   : > { %1600 = shalt.err (!%p1597_p0)
}
  0x88   : > { %s1601_s21 = scalar_lea.vmem %s2008_s13, 128  ;;  %s1722_s11 = smov [#allocation7]  }
  0x89   : > { %p1602_p1 = scmp.ne.s32.totalorder %s2008_s13, %s1601_s21  ;;  %s1606_s25 = sshll.u32 %s1722_s11, 4  ;;  %s1607_s25 = int_to_ptr.vmem [resolvable:$false] %s1606_s25 }
  0x8a   : > { %s1608_s20 = scalar_lea.vmem %s1607_s25, 256  ;;  %p1609_p6 = scmp.lt.s32.totalorder %s2008_s13, %s1607_s25 }
  0x8b   : > { %p1604_p2 = pnand %p1602_p1, %p1558_p9  ;;  %p1610_p10 = scmp.lt.s32.totalorder %s1608_s20, %s1601_s21 }
  0x8d   : > { %p1605_p4 = pneg %p1604_p2  ;;  %p1611_p3 = por %p1610_p10, %p1609_p6 }
  0x8f   : > { %p1612_p11 = pnand %p1611_p3, %p1605_p4 }
  0x91   : > { %1615 = shalt.err (!%p1612_p11)
}
  0x92   : > { %s2430_s2 = smov 4   ;;  %s2431_s14 = smov 64  }
  0x93   : > { %1284 = dma.hbm_to_vmem [thread:$0]  (!%p1973_p5), %s2015_s19, 128, %s2008_s13, %s2017_s0, %s2431_s14, %s2431_s14, %s2430_s2  }
  0x94   : > { %331 = sbr.rel (%p1851_p8) target bundleno = 673 (0x2a1), region = 48  ;;  %s2049_s24 = sand.u32 (!%p1851_p8), 1, %s1698_s27  }
  0x95   : > { %s1178_s5 = sshll.u32 (!%p1851_p8), %s2049_s24, 2  ;;  %s334_s22 = scalar_lea.sflag (!%p1851_p8), [#allocation4], %s2049_s24 }
  0x96   : > { %s2053_s17 = scalar_lea.vmem (!%p1851_p8), [#allocation3], %s1178_s5  ;;  %p2432_p9 = scmp.ne.s32.totalorder (!%p1851_p8), %s2417_s10, 0 }
  0x9b   : > { %1669 = dma.done.wait (%p2432_p9), %s334_s22, 64  }
  0x9c   : > { %1671 = vsyncadd (%p2432_p9), %s334_s22, 4294967232  ;;  %s342_s0 = sand.u32 1, %s1832_s6   ;;  %s1179_s12 = sshll.u32 %s2049_s24, 3 }
  0x9d   : > { %s343_s23 = scalar_lea.sflag [#allocation8], %s342_s0  ;;  %s2063_s13 = scalar_lea.vmem [#allocation7], %s1179_s12 }
  0x9e   : > { %1673 = dma.done.wait (%p2432_p9), %s343_s23, 128  }
  0x9f   : > { %1675 = vsyncadd (%p2432_p9), %s343_s23, 4294967168  ;;  %p2433_p8 = scmp.eq.s32.totalorder %s1832_s6, 0 }
  0xa1   : > { %1677 = dma.done.wait (%p2433_p8), [#allocation8], 256   ;;  %p2434_p5 = pmov %p2433_p8 }
  0xa3   : > { %1679 = vsyncadd (%p2434_p5), [#allocation8], 4294967040  ;;  %p2435_p13 = pmov %p2434_p5 }
  0xa4   : > { %p2436_p7 = pmov %p2434_p5 }
  0xa5   : > { %1681 = dma.done.wait (%p2435_p13), [#allocation11], 256  }
  0xa6   : > { %1683 = vsyncadd (%p2436_p7), [#allocation11], 4294967040  ;;  %p2437_p12 = pmov %p2434_p5 }
  0xa7   : > { %p2438_p0 = pmov %p2434_p5 }
  0xa8   : > { %1685 = dma.done.wait (%p2437_p12), [#allocation6], 16  }
  0xa9   : > { %1687 = vsyncadd (%p2438_p0), [#allocation6], 4294967280 }
  0xaa   : > { %363 = sfence }
  0xab   : > { %v1416_v0 = vld [vmem:[#allocation9] sm:$0xff]   ;;  %v1723_v1 = vmov 0.0   ;;  %v1417_v2 = vld [vmem:[#allocation9 + $0x8] sm:$0xff]   ;;  %vm1724_vm0 = vmmov 0   ;;  %v1418_v3 = vld [vmem:[#allocation10] sm:$0xff]   ;;  %v1725_v5 = vmov 2  }
  0xac   : > { %1234 = vmatprep.subr.bf16.mxu0 %v1723_v1  ;;  %1242 = vmatprep.subr.bf16.mxu1 %v1723_v1  ;;  %v1419_v4 = vld [vmem:[#allocation10 + $0x8] sm:$0xff]   ;;  %v396_v6 = vld [vmem:[%s2053_s17] sm:$0xf]  ;;  %vm415_vm1 = vcmask 261120   ;;  %v1726_v7 = vmov 0   ;;  %v1727_v16 = vmov 16  }
  0xad   : > { %1235 = vmatpush3.bf16.msra.mxu0 %v1416_v0  ;;  %1238 = vmatprep.mubr.msk.bf16.mxu0 %vm1724_vm0, %v1723_v1  ;;  %v1420_v8 = vld [vmem:[%s2063_s13] sm:$0xff]   ;;  %v1728_v17 = vmov 1   ;;  %v1729_v19 = vmov 19   ;;  %v1730_v20 = vmov 3   ;;  %v1731_v21 = vmov 22   ;;  %s2170_s19 = sld [smem:[#allocation12]] }
  0xae   : > { %1236 = vmatprep.subr.bf16.mxu0 %v1723_v1  ;;  %1246 = vmatprep.mubr.msk.bf16.mxu1 %vm1724_vm0, %v1723_v1  ;;  %v1732_v22 = vmov 4   ;;  %v1733_v23 = vmov 25   ;;  %v1734_v24 = vmov 5   ;;  %v1735_v25 = vmov 28   ;;  %v1187_v31 = vld [vmem:[%s2404_s4] ss:$0 sm:$0xff] }
  0xaf   : > { %1243 = vmatpush3.bf16.msra.mxu1 %v1418_v3  ;;  %1386 = vset.pattern.permute.xlu0 %v1725_v5  ;;  %v1736_v26 = vmov 6   ;;  %v1737_v27 = vmov 7   ;;  %v1738_v28 = vmov 8   ;;  %v1739_v29 = vmov 9   ;;  %s2172_s18 = sld [smem:[#allocation12 + $0x1]]  ;;  %s2175_s21 = sld [smem:[#allocation2]] }
  0xb0   : > { %1244 = vmatprep.subr.bf16.mxu1 %v1723_v1  ;;  %1384 = vset.pattern.permute.xlu1 %v1726_v7  ;;  %v1740_v30 = vmov 10   ;;  %v1741_v32 = vmov 11   ;;  %v1742_v34 = vmov 12   ;;  %v1743_v36 = vmov 13   ;;  %s2180_s11 = sld [smem:[#allocation12 + $0x2]]  ;;  %s2186_s25 = sld [smem:[#allocation12 + $0x3]] }
  0xb1   : > { %1237 = vmatpush3.bf16.msra.mxu0 %v1417_v2  ;;  %v1744_v37 = vmov 14   ;;  %v1745_v38 = vmov 15   ;;  %v1746_v39 = vmov 17   ;;  %v1747_v40 = vmov 18   ;;  %s2190_s20 = sld [smem:[#allocation12 + $0x4]]  ;;  %s2196_s2 = sld [smem:[#allocation12 + $0x5]] }
  0xb2   : > { %v1748_v41 = vmov 20   ;;  %v1749_v42 = vmov 21   ;;  %v1750_v43 = vmov 23   ;;  %v1751_v44 = vmov 24   ;;  %s2202_s14 = sld [smem:[#allocation12 + $0x6]]  ;;  %s2208_s5 = sld [smem:[#allocation12 + $0x7]] }
  0xb3   : > { %1245 = vmatpush3.bf16.msra.mxu1 %v1419_v4  ;;  %v1752_v45 = vmov 31   ;;  %v1753_v46 = vmov 26   ;;  %v1754_v47 = vmov 27   ;;  %v1755_v48 = vmov 29   ;;  %s2219_s22 = sld [smem:[#allocation12 + $0x8]]  ;;  %s2225_s17 = sld [smem:[#allocation12 + $0x9]] }
  0xb4   : > { %1239 = vmatmul.mubr.msk.bf16.vlgmr.msra.gmra.mrb[0].mxu0 %vm415_vm1, %v396_v6  ;;  %v1756_v49 = vmov 30   ;;  %v570_v3 = vlaneseq  ;;  %s2236_s0 = sld [smem:[#allocation12 + $0xa]]  ;;  %s2242_s23 = sld [smem:[#allocation12 + $0xb]]  ;;  %vm1014_vm2 = vcmask 130048  }
  0xb5   : > { %s2247_s13 = sld [smem:[#allocation12 + $0xc]]  ;;  %s2252_s6 = sld [smem:[#allocation12 + $0xd]] }
  0xb6   : > { %1247 = vmatmul.mubr.msk.bf16.vlgmr.msra.gmra.mrb[0].mxu1 %vm415_vm1, %v1420_v8  ;;  %v571_v4 = vshrl.u32 %v570_v3, 7  ;;  %s2258_s10 = sld [smem:[#allocation12 + $0xe]]  ;;  %p2439_p2 = scmp.ne.s32.totalorder %s2426_s15, 0 }
  0xb8   : > { %v2142_v7 = vsub.s32 1, %v571_v4 }
 0x187   : > { %v2083_v9 = vpop.f32.mrb[0].mxu0 }
 0x188   : > { %595 = vperm.xlu0 %1386, %v2083_v9   ;;  %567 = vperm.xlu1 %1384, %v2083_v9   ;;  %v1240_v10 = vpop.f32.mrb[1].mxu0 }
 0x189   : > { %v456_v11 = vpop.f32.mrb[2].mxu0  ;;  %v524_v12 = vpop.f32.mrb[0].mxu1 }
 0x18a   : > { %v1241_v13 = vpop.f32.mrb[3].mxu0  ;;  %v1248_v14 = vpop.f32.mrb[1].mxu1  ;;  %v525_v33 = vadd.f32 %v1187_v31, %v524_v12  ;;  %v2148_v11 = vsub.s32 2, %v571_v4 }
 0x18b   : > { %v527_v15 = vpop.f32.mrb[2].mxu1  ;;  %v2152_v14 = vsub.s32 3, %v571_v4 }
 0x18c   : > { %1400 = vset.pattern.permute.xlu0 %v1727_v16  ;;  %1385 = vset.pattern.permute.xlu1 %v1728_v17  ;;  %v1249_v18 = vpop.f32.mrb[3].mxu1  ;;  %v528_v35 = vadd.f32 %v1187_v31, %v527_v15  ;;  %v2157_v17 = vsub.s32 4, %v571_v4 }
 0x18d   : > { %791 = vperm.xlu0 %1400, %v2083_v9   ;;  %581 = vperm.xlu1 %1385, %v2083_v9  }
 0x191   : > { %1403 = vset.pattern.permute.xlu0 %v1729_v19  ;;  %1387 = vset.pattern.permute.xlu1 %v1730_v20  ;;  %v2159_v19 = vsub.s32 5, %v571_v4 }
 0x192   : > { %833 = vperm.xlu0 %1403, %v2083_v9   ;;  %609 = vperm.xlu1 %1387, %v2083_v9  }
 0x196   : > { %1406 = vset.pattern.permute.xlu0 %v1731_v21  ;;  %1388 = vset.pattern.permute.xlu1 %v1732_v22  ;;  %v2162_v22 = vsub.s32 6, %v571_v4 }
 0x197   : > { %875 = vperm.xlu0 %1406, %v2083_v9   ;;  %623 = vperm.xlu1 %1388, %v2083_v9  }
 0x19b   : > { %1409 = vset.pattern.permute.xlu0 %v1733_v23  ;;  %1389 = vset.pattern.permute.xlu1 %v1734_v24 }
 0x19c   : > { %917 = vperm.xlu0 %1409, %v2083_v9   ;;  %637 = vperm.xlu1 %1389, %v2083_v9  }
 0x1a0   : > { %1412 = vset.pattern.permute.xlu0 %v1735_v25  ;;  %1390 = vset.pattern.permute.xlu1 %v1736_v26 }
 0x1a1   : > { %959 = vperm.xlu0 %1412, %v2083_v9   ;;  %651 = vperm.xlu1 %1390, %v2083_v9  }
 0x1a5   : > { %1391 = vset.pattern.permute.xlu1 %v1737_v27  ;;  %v2168_v27 = vsub.s32 7, %v571_v4 }
 0x1a6   : > { %665 = vperm.xlu1 %1391, %v2083_v9  }
 0x1aa   : > { %1392 = vset.pattern.permute.xlu1 %v1738_v28 }
 0x1ab   : > { %679 = vperm.xlu1 %1392, %v2083_v9  }
 0x1af   : > { %1393 = vset.pattern.permute.xlu1 %v1739_v29 }
 0x1b0   : > { %693 = vperm.xlu1 %1393, %v2083_v9  }
 0x1b4   : > { %1394 = vset.pattern.permute.xlu1 %v1740_v30 }
 0x1b5   : > { %707 = vperm.xlu1 %1394, %v2083_v9  }
 0x1b9   : > { %1395 = vset.pattern.permute.xlu1 %v1741_v32 }
 0x1ba   : > { %721 = vperm.xlu1 %1395, %v2083_v9  }
 0x1be   : > { %1396 = vset.pattern.permute.xlu1 %v1742_v34 }
 0x1bf   : > { %531 = vxpose.xlu0.b32.start [1/2] (short) (narrow) %v525_v33, 32  ;;  %735 = vperm.xlu1 %1396, %v2083_v9  }
 0x1c3   : > { %532 = vxpose.xlu0.b32.end [2/2] (short) (narrow) %v528_v35, 32  ;;  %1397 = vset.pattern.permute.xlu1 %v1743_v36 }
 0x1c4   : > { %749 = vperm.xlu1 %1397, %v2083_v9  }
 0x1c8   : > { %1398 = vset.pattern.permute.xlu1 %v1744_v37 }
 0x1c9   : > { %763 = vperm.xlu1 %1398, %v2083_v9  }
 0x1cd   : > { %1399 = vset.pattern.permute.xlu1 %v1745_v38 }
 0x1ce   : > { %777 = vperm.xlu1 %1399, %v2083_v9  }
 0x1d2   : > { %1401 = vset.pattern.permute.xlu1 %v1746_v39  ;;  %v577_v39 = vstv %s2170_s19  ;;  %s2264_s19 = sld [smem:[#allocation12 + $0xf]] }
 0x1d3   : > { %805 = vperm.xlu1 %1401, %v2083_v9  }
 0x1d7   : > { %1402 = vset.pattern.permute.xlu1 %v1747_v40 }
 0x1d8   : > { %819 = vperm.xlu1 %1402, %v2083_v9  }
 0x1dc   : > { %1404 = vset.pattern.permute.xlu1 %v1748_v41  ;;  %v591_v41 = vstv %s2172_s18  ;;  %s2275_s18 = sld [smem:[#allocation12 + $0x10]] }
 0x1dd   : > { %847 = vperm.xlu1 %1404, %v2083_v9  }
 0x1e1   : > { %1405 = vset.pattern.permute.xlu1 %v1749_v42 }
 0x1e2   : > { %861 = vperm.xlu1 %1405, %v2083_v9  }
 0x1e6   : > { %1407 = vset.pattern.permute.xlu1 %v1750_v43 }
 0x1e7   : > { %889 = vperm.xlu1 %1407, %v2083_v9  }
 0x1eb   : > { %1408 = vset.pattern.permute.xlu1 %v1751_v44 }
 0x1ec   : > { %903 = vperm.xlu1 %1408, %v2083_v9   ;;  %1415 = vset.pattern.permute.xlu0 %v1752_v45  ;;  %v564_v45 = vstv %s2175_s21  ;;  %s2281_s21 = sld [smem:[#allocation12 + $0x11]] }
 0x1f0   : > { %1410 = vset.pattern.permute.xlu1 %v1753_v46 }
 0x1f1   : > { %931 = vperm.xlu1 %1410, %v2083_v9  }
 0x1f4   : > { %1001 = vperm.xlu0 %1415, %v2083_v9  }
 0x1f5   : > { %1411 = vset.pattern.permute.xlu1 %v1754_v47 }
 0x1f6   : > { %945 = vperm.xlu1 %1411, %v2083_v9  }
 0x1fa   : > { %1413 = vset.pattern.permute.xlu1 %v1755_v48 }
 0x1fb   : > { %973 = vperm.xlu1 %1413, %v2083_v9  }
 0x1ff   : > { %1414 = vset.pattern.permute.xlu1 %v1756_v49 }
 0x200   : > { %987 = vperm.xlu1 %1414, %v2083_v9   ;;  %v2144_v9 = vsub.s32 0, %v571_v4 }
 0x207   : > { %v568_v50 = vpop.permute.xlu1 %567  ;;  %v596_v56 = vpop.permute.xlu0 %595 }
 0x20c   : > { %v582_v51 = vpop.permute.xlu1 %581  ;;  %v2122_v59 = vpop.permute.xlu0 %791 }
 0x211   : > { %v610_v52 = vpop.permute.xlu1 %609  ;;  %v2126_v61 = vpop.permute.xlu0 %833 }
 0x216   : > { %v624_v53 = vpop.permute.xlu1 %623  ;;  %v2130_v63 = vpop.permute.xlu0 %875 }
 0x21b   : > { %v638_v54 = vpop.permute.xlu1 %637  ;;  %v2134_v1 = vpop.permute.xlu0 %917 }
 0x220   : > { %v652_v55 = vpop.permute.xlu1 %651  ;;  %v2138_v5 = vpop.permute.xlu0 %959 }
 0x225   : > { %v666_v57 = vpop.permute.xlu1 %665 }
 0x22a   : > { %v2120_v58 = vpop.permute.xlu1 %679 }
 0x22f   : > { %v2124_v60 = vpop.permute.xlu1 %693 }
 0x234   : > { %v2128_v62 = vpop.permute.xlu1 %707 }
 0x239   : > { %v2132_v0 = vpop.permute.xlu1 %721 }
 0x23e   : > { %v2136_v2 = vpop.permute.xlu1 %735 }
 0x23f   : > { %v547_v8 = vpop.trf.xlu0 }
 0x240   : > { %v587_v12 = vrot.slane %v547_v8, %v2142_v7  ;;  %v573_v13 = vrot.slane %v547_v8, %v2144_v9  ;;  %v601_v16 = vrot.slane %v547_v8, %v2148_v11  ;;  %v615_v21 = vrot.slane %v547_v8, %v2152_v14 }
 0x241   : > { %v629_v24 = vrot.slane %v547_v8, %v2157_v17  ;;  %v643_v26 = vrot.slane %v547_v8, %v2159_v19  ;;  %v657_v29 = vrot.slane %v547_v8, %v2162_v22  ;;  %v671_v33 = vrot.slane %v547_v8, %v2168_v27 }
 0x242   : > { %v588_v18 = vadd.f32 %v587_v12, %v582_v51  ;;  %v574_v20 = vadd.f32 %v573_v13, %v568_v50  ;;  %v602_v23 = vadd.f32 %v601_v16, %v596_v56  ;;  %v616_v28 = vadd.f32 %v615_v21, %v610_v52 }
 0x243   : > { %v2140_v6 = vpop.permute.xlu1 %749  ;;  %v630_v30 = vadd.f32 %v629_v24, %v624_v53  ;;  %v2177_v31 = vpop.trf.xlu0  ;;  %v644_v32 = vadd.f32 %v643_v26, %v638_v54  ;;  %v658_v35 = vadd.f32 %v657_v29, %v652_v55  ;;  %v672_v37 = vadd.f32 %v671_v33, %v666_v57 }
 0x244   : > { %1421 = vtanh.f32 %v588_v18  ;;  %v685_v36 = vrot.slane %v2177_v31, %v2144_v9  ;;  %v699_v38 = vrot.slane %v2177_v31, %v2142_v7  ;;  %v713_v44 = vrot.slane %v2177_v31, %v2148_v11 }
 0x245   : > { %1423 = vtanh.f32 %v574_v20  ;;  %v605_v50 = vstv %s2180_s11  ;;  %v727_v51 = vrot.slane %v2177_v31, %v2152_v14  ;;  %v741_v56 = vrot.slane %v2177_v31, %v2157_v17  ;;  %s2285_s11 = sld [smem:[#allocation12 + $0x12]] }
 0x246   : > { %1425 = vtanh.f32 %v602_v23  ;;  %v686_v46 = vadd.f32 %v685_v36, %v2120_v58  ;;  %v700_v49 = vadd.f32 %v699_v38, %v2124_v60  ;;  %v714_v55 = vadd.f32 %v713_v44, %v2128_v62 }
 0x247   : > { %1427 = vtanh.f32 %v616_v28  ;;  %v619_v58 = vstv %s2186_s25  ;;  %v755_v8 = vrot.slane %v2177_v31, %v2159_v19  ;;  %v633_v12 = vstv %s2190_s20  ;;  %v2228_v24 = vpop.trf.xlu0  ;;  %s2296_s25 = sld [smem:[#allocation12 + $0x13]]  ;;  %s2300_s20 = sld [smem:[#allocation12 + $0x14]] }
 0x248   : > { %v2146_v10 = vpop.permute.xlu1 %763  ;;  %1429 = vtanh.f32 %v630_v30  ;;  %v728_v62 = vadd.f32 %v727_v51, %v2132_v0  ;;  %v647_v20 = vstv %s2196_s2  ;;  %v769_v21 = vrot.slane %v2177_v31, %v2162_v22  ;;  %s2305_s2 = sld [smem:[#allocation12 + $0x15]] }
 0x249   : > { %1431 = vtanh.f32 %v644_v32  ;;  %v742_v23 = vadd.f32 %v741_v56, %v2136_v2  ;;  %v756_v30 = vadd.f32 %v755_v8, %v2140_v6  ;;  %v661_v32 = vstv %s2202_s14  ;;  %s2312_s14 = sld [smem:[#allocation12 + $0x16]] }
 0x24a   : > { %1433 = vtanh.f32 %v658_v35  ;;  %v783_v33 = vrot.slane %v2177_v31, %v2168_v27  ;;  %v675_v38 = vstv %s2208_s5  ;;  %s2316_s5 = sld [smem:[#allocation12 + $0x17]] }
 0x24b   : > { %1435 = vtanh.f32 %v672_v37  ;;  %v770_v37 = vadd.f32 %v769_v21, %v2146_v10  ;;  %v689_v10 = vstv %s2219_s22  ;;  %s2323_s22 = sld [smem:[#allocation12 + $0x18]] }
 0x24c   : > { %1437 = vtanh.f32 %v686_v46 }
 0x24d   : > { %v2154_v15 = vpop.permute.xlu1 %777  ;;  %1439 = vtanh.f32 %v700_v49  ;;  %v825_v49 = vrot.slane %v2228_v24, %v2148_v11 }
 0x24e   : > { %v1422_v40 = vpop.eup %1421  ;;  %1441 = vtanh.f32 %v714_v55  ;;  %v839_v55 = vrot.slane %v2228_v24, %v2152_v14 }
 0x24f   : > { %v1424_v43 = vpop.eup %1423  ;;  %v592_v52 = vmul.f32 %v1422_v40, %v591_v41  ;;  %1443 = vtanh.f32 %v728_v62  ;;  %v784_v41 = vadd.f32 %v783_v33, %v2154_v15  ;;  %v773_v33 = vstv %s2258_s10  ;;  %s1221_s10 = sld [smem:[#allocation12 + $0x1e]] }
 0x250   : > { %v578_v47 = vmul.f32 %v1424_v43, %v577_v39  ;;  %v1426_v48 = vpop.eup %1425  ;;  %1445 = vtanh.f32 %v742_v23  ;;  %v797_v39 = vrot.slane %v2228_v24, %v2144_v9  ;;  %v811_v43 = vrot.slane %v2228_v24, %v2142_v7 }
 0x251   : > { %v1428_v54 = vpop.eup %1427  ;;  %v606_v60 = vmul.f32 %v1426_v48, %v605_v50  ;;  %1447 = vtanh.f32 %v756_v30  ;;  %v703_v48 = vstv %s2225_s17  ;;  %v759_v23 = vstv %s2252_s6  ;;  %s2329_s17 = sld [smem:[#allocation12 + $0x19]]  ;;  %s1219_s6 = sld [smem:[#allocation12 + $0x1c]] }
 0x252   : > { %v2165_v25 = vpop.permute.xlu1 %805  ;;  %v579_v53 = vadd.f32 %v578_v47, %v564_v45  ;;  %v1430_v4 = vpop.eup %1429  ;;  %v620_v16 = vmul.f32 %v1428_v54, %v619_v58  ;;  %1449 = vtanh.f32 %v770_v37  ;;  %v798_v15 = vadd.f32 %v797_v39, %v2122_v59 }
 0x253   : > { %v1432_v18 = vpop.eup %1431  ;;  %v634_v26 = vmul.f32 %v1430_v4, %v633_v12  ;;  %1451 = vtanh.f32 %v784_v41  ;;  %v717_v54 = vstv %s2236_s0  ;;  %v731_v4 = vstv %s2242_s23  ;;  %s2333_s0 = sld [smem:[#allocation12 + $0x1a]]  ;;  %s2339_s23 = sld [smem:[#allocation12 + $0x1b]] }
 0x254   : > { %v593_v3 = vadd.f32 %v592_v52, %v579_v53  ;;  %v1434_v0 = vpop.eup %1433  ;;  %v648_v35 = vmul.f32 %v1432_v18, %v647_v20  ;;  %v812_v53 = vadd.f32 %v811_v43, %v2165_v25  ;;  %1453 = vtanh.f32 %v798_v15 }
 0x255   : > { %v1436_v2 = vpop.eup %1435  ;;  %v662_v6 = vmul.f32 %v1434_v0, %v661_v32 }
 0x256   : > { %v607_v13 = vadd.f32 %v606_v60, %v593_v3  ;;  %v1438_v31 = vpop.eup %1437  ;;  %v676_v44 = vmul.f32 %v1436_v2, %v675_v38  ;;  %v853_v3 = vrot.slane %v2228_v24, %v2157_v17  ;;  %1455 = vtanh.f32 %v812_v53 }
 0x257   : > { %v2182_v34 = vpop.permute.xlu1 %819  ;;  %v1440_v47 = vpop.eup %1439  ;;  %v690_v50 = vmul.f32 %v1438_v31, %v689_v10  ;;  %v787_v2 = vstv %s2264_s19  ;;  %v801_v10 = vstv %s2275_s18  ;;  %s1222_s19 = sld [smem:[#allocation12 + $0x1f]]  ;;  %s1224_s18 = sshll.u32 %s1706_s29, 7 }
 0x258   : > { %v621_v29 = vadd.f32 %v620_v16, %v607_v13  ;;  %v1442_v52 = vpop.eup %1441  ;;  %v704_v56 = vmul.f32 %v1440_v47, %v703_v48  ;;  %v826_v59 = vadd.f32 %v825_v49, %v2182_v34  ;;  %v745_v13 = vstv %s2247_s13  ;;  %s1220_s13 = sld [smem:[#allocation12 + $0x1d]] }
 0x259   : > { %v1444_v60 = vpop.eup %1443  ;;  %v718_v8 = vmul.f32 %v1442_v52, %v717_v54  ;;  %v867_v16 = vrot.slane %v2228_v24, %v2159_v19  ;;  %v840_v34 = vadd.f32 %v839_v55, %v2126_v61  ;;  %v843_v55 = vstv %s2296_s25 }
 0x25a   : > { %v635_v36 = vadd.f32 %v634_v26, %v621_v29  ;;  %v1446_v62 = vpop.eup %1445  ;;  %v732_v20 = vmul.f32 %v1444_v60, %v731_v4  ;;  %v881_v26 = vrot.slane %v2228_v24, %v2162_v22  ;;  %1457 = vtanh.f32 %v826_v59 }
 0x25b   : > { %v1448_v21 = vpop.eup %1447  ;;  %v746_v0 = vmul.f32 %v1446_v62, %v745_v13  ;;  %1459 = vtanh.f32 %v840_v34  ;;  %v857_v59 = vstv %s2300_s20  ;;  %v871_v13 = vstv %s2305_s2  ;;  %s2351_s2 = scalar_lea.hbm %s2407_s7, %s1224_s18 }
 0x25c   : > { %v2194_v42 = vpop.permute.xlu1 %847  ;;  %v649_v40 = vadd.f32 %v648_v35, %v635_v36  ;;  %v1450_v32 = vpop.eup %1449  ;;  %v760_v35 = vmul.f32 %v1448_v21, %v759_v23 }
 0x25d   : > { %v854_v29 = vadd.f32 %v853_v3, %v2194_v42  ;;  %v2288_v36 = vpop.trf.xlu0  ;;  %v1452_v39 = vpop.eup %1451  ;;  %v895_v42 = vrot.slane %v2228_v24, %v2168_v27 }
 0x25e   : > { %v663_v46 = vadd.f32 %v662_v6, %v649_v40  ;;  %v882_v6 = vadd.f32 %v881_v26, %v2130_v63  ;;  %v909_v40 = vrot.slane %v2288_v36, %v2144_v9  ;;  %v1454_v41 = vpop.eup %1453  ;;  %v923_v43 = vrot.slane %v2288_v36, %v2142_v7 }
 0x25f   : > { %1461 = vtanh.f32 %v854_v29  ;;  %v815_v9 = vstv %s2281_s21  ;;  %v937_v48 = vrot.slane %v2288_v36, %v2148_v11  ;;  %v802_v7 = vmul.f32 %v1454_v41, %v801_v10  ;;  %s394_s21 = scalar_lea.vmem [#allocation13], %s1179_s12  ;;  %s1757_s12 = smov [#allocation13]  }
 0x260   : > { %v677_v51 = vadd.f32 %v676_v44, %v663_v46  ;;  %v788_v44 = vmul.f32 %v1452_v39, %v787_v2  ;;  %v1456_v46 = vpop.eup %1455  ;;  %v965_v53 = vrot.slane %v2288_v36, %v2157_v17  ;;  %v979_v3 = vrot.slane %v2288_v36, %v2159_v19 }
 0x261   : > { %v2213_v57 = vpop.permute.xlu1 %861  ;;  %v816_v52 = vmul.f32 %v1456_v46, %v815_v9  ;;  %v885_v19 = vstv %s2312_s14  ;;  %v955_v41 = vstv %s2339_s23  ;;  %v969_v46 = vstv %s1219_s6  ;;  %s1017_s14 = scalar_lea.sflag [#allocation5], %s2049_s24 }
 0x262   : > { %v691_v58 = vadd.f32 %v690_v50, %v677_v51  ;;  %v868_v61 = vadd.f32 %v867_v16, %v2213_v57  ;;  %v774_v57 = vmul.f32 %v1450_v32, %v773_v33  ;;  %v829_v51 = vstv %s2285_s11  ;;  %s1031_s11 = sshll.u32 %s394_s21, 4  ;;  %s2353_s11 = int_to_ptr.vmem [resolvable:$true] %s1031_s11 }
 0x263   : > { %v966_v4 = vadd.f32 %v965_v53, %v2138_v5  ;;  %v993_v16 = vrot.slane %v2288_v36, %v2162_v22  ;;  %v1007_v5 = vrot.slane %v2288_v36, %v2168_v27  ;;  %v1011_v53 = vstv %s1222_s19  ;;  %s1616_s29 = scalar_lea.vmem %s2353_s11, 128 }
 0x264   : > { %v705_v12 = vadd.f32 %v704_v56, %v691_v58  ;;  %1463 = vtanh.f32 %v868_v61  ;;  %v1458_v50 = vpop.eup %1457  ;;  %v913_v61 = vstv %s2323_s22  ;;  %p1617_p1 = scmp.ne.s32.totalorder %s2353_s11, %s1616_s29 }
 0x265   : > { %1465 = vtanh.f32 %v882_v6  ;;  %v1460_v54 = vpop.eup %1459  ;;  %v830_v56 = vmul.f32 %v1458_v50, %v829_v51 }
 0x266   : > { %v2230_v28 = vpop.permute.xlu1 %889  ;;  %v719_v18 = vadd.f32 %v718_v8, %v705_v12  ;;  %p1618_p4 = pnand %p1617_p1, %p2439_p2 }
 0x267   : > { %v896_v63 = vadd.f32 %v895_v42, %v2230_v28  ;;  %v924_v28 = vadd.f32 %v923_v43, %v2134_v1  ;;  %v951_v1 = vrot.slane %v2288_v36, %v2152_v14  ;;  %v941_v42 = vstv %s2333_s0 }
 0x268   : > { %v733_v30 = vadd.f32 %v732_v20, %v719_v18  ;;  %p1619_p6 = pneg %p1618_p4 }
 0x269   : > { %1467 = vtanh.f32 %v896_v63  ;;  %v1462_v60 = vpop.eup %1461 }
 0x26a   : > { %v747_v37 = vadd.f32 %v746_v0, %v733_v30  ;;  %v858_v34 = vmul.f32 %v1462_v60, %v857_v59  ;;  %v899_v30 = vstv %s2316_s5  ;;  %s1620_s5 = sshll.u32 %s1757_s12, 4  ;;  %s1621_s5 = int_to_ptr.vmem [resolvable:$false] %s1620_s5 }
 0x26b   : > { %v2250_v45 = vpop.permute.xlu1 %903  ;;  %s1622_s22 = scalar_lea.vmem %s1621_s5, 256  ;;  %p1623_p10 = scmp.lt.s32.totalorder %s2353_s11, %s1621_s5 }
 0x26c   : > { %v761_v31 = vadd.f32 %v760_v35, %v747_v37  ;;  %v910_v47 = vadd.f32 %v909_v40, %v2250_v45  ;;  %v927_v37 = vstv %s2329_s17  ;;  %p1624_p3 = scmp.lt.s32.totalorder %s1622_s22, %s1616_s29 }
 0x26e   : > { %v775_v24 = vadd.f32 %v774_v57, %v761_v31  ;;  %1469 = vtanh.f32 %v910_v47  ;;  %v1464_v62 = vpop.eup %1463  ;;  %p1625_p11 = por %p1624_p3, %p1623_p10 }
 0x26f   : > { %1471 = vtanh.f32 %v924_v28  ;;  %v1466_v20 = vpop.eup %1465  ;;  %v872_v23 = vmul.f32 %v1464_v62, %v871_v13 }
 0x270   : > { %v2270_v25 = vpop.permute.xlu1 %931  ;;  %v789_v49 = vadd.f32 %v788_v44, %v775_v24  ;;  %v886_v32 = vmul.f32 %v1466_v20, %v885_v19  ;;  %v983_v24 = vstv %s1220_s13  ;;  %p1626_p9 = pnand %p1625_p11, %p1619_p6 }
 0x271   : > { %v938_v11 = vadd.f32 %v937_v48, %v2270_v25  ;;  %v844_v25 = vmul.f32 %v1460_v54, %v843_v55 }
 0x272   : > { %v803_v45 = vadd.f32 %v802_v7, %v789_v49  ;;  %v997_v7 = vstv %s1221_s10 }
 0x273   : > { %1473 = vtanh.f32 %v938_v11  ;;  %v1002_v26 = vpop.permute.xlu0 %1001  ;;  %v1468_v0 = vpop.eup %1467 }
 0x274   : > { %v817_v58 = vadd.f32 %v816_v52, %v803_v45  ;;  %v1008_v35 = vadd.f32 %v1007_v5, %v1002_v26  ;;  %v900_v27 = vmul.f32 %v1468_v0, %v899_v30 }
 0x275   : > { %v946_v38 = vpop.permute.xlu1 %945 }
 0x276   : > { %v952_v17 = vadd.f32 %v951_v1, %v946_v38  ;;  %v831_v8 = vadd.f32 %v830_v56, %v817_v58 }
 0x278   : > { %v845_v18 = vadd.f32 %v844_v25, %v831_v8  ;;  %1475 = vtanh.f32 %v952_v17  ;;  %v1470_v33 = vpop.eup %1469 }
 0x279   : > { %1477 = vtanh.f32 %v966_v4  ;;  %v1472_v2 = vpop.eup %1471  ;;  %v914_v38 = vmul.f32 %v1470_v33, %v913_v61 }
 0x27a   : > { %v974_v15 = vpop.permute.xlu1 %973  ;;  %v859_v29 = vadd.f32 %v858_v34, %v845_v18  ;;  %v928_v57 = vmul.f32 %v1472_v2, %v927_v37 }
 0x27b   : > { %v980_v14 = vadd.f32 %v979_v3, %v974_v15 }
 0x27c   : > { %v873_v22 = vadd.f32 %v872_v23, %v859_v29 }
 0x27d   : > { %1479 = vtanh.f32 %v980_v14  ;;  %v1474_v6 = vpop.eup %1473 }
 0x27e   : > { %v887_v36 = vadd.f32 %v886_v32, %v873_v22  ;;  %v942_v63 = vmul.f32 %v1474_v6, %v941_v42 }
 0x27f   : > { %v988_v12 = vpop.permute.xlu1 %987 }
 0x280   : > { %v994_v21 = vadd.f32 %v993_v16, %v988_v12  ;;  %v901_v39 = vadd.f32 %v900_v27, %v887_v36 }
 0x282   : > { %1481 = vtanh.f32 %v994_v21  ;;  %v915_v40 = vadd.f32 %v914_v38, %v901_v39  ;;  %v1476_v31 = vpop.eup %1475 }
 0x283   : > { %1483 = vtanh.f32 %v1008_v35  ;;  %v1478_v43 = vpop.eup %1477  ;;  %v956_v47 = vmul.f32 %v1476_v31, %v955_v41 }
 0x284   : > { %v929_v10 = vadd.f32 %v928_v57, %v915_v40  ;;  %v970_v50 = vmul.f32 %v1478_v43, %v969_v46 }
 0x286   : > { %v943_v9 = vadd.f32 %v942_v63, %v929_v10 }
 0x287   : > { %v1480_v44 = vpop.eup %1479 }
 0x288   : > { %v957_v49 = vadd.f32 %v956_v47, %v943_v9  ;;  %v984_v15 = vmul.f32 %v1480_v44, %v983_v24 }
 0x28a   : > { %v971_v28 = vadd.f32 %v970_v50, %v957_v49 }
 0x28c   : > { %v1482_v48 = vpop.eup %1481  ;;  %v985_v45 = vadd.f32 %v984_v15, %v971_v28 }
 0x28d   : > { %v998_v51 = vmul.f32 %v1482_v48, %v997_v7  ;;  %v1484_v52 = vpop.eup %1483 }
 0x28e   : > { %v1012_v11 = vmul.f32 %v1484_v52, %v1011_v53 }
 0x28f   : > { %v999_v54 = vadd.f32 %v998_v51, %v985_v45 }
 0x291   : > { %v1013_v55 = vadd.f32 %v1012_v11, %v999_v54 }
 0x293   : > { %1015 = vst.msk [vmem:[%s394_s21] sm:$0xff] %vm1014_vm2, %v1013_v55 }
 0x294   : > { %1629 = shalt.err (!%p1626_p9)
}
 0x295   : > { %s1630_s24 = scalar_lea.hbm %s2351_s2, 128  ;;  %s1634_s23 = scalar_lea.hbm %s2407_s7, 256 }
 0x296   : > { %p1631_p8 = scmp.ne.s32.totalorder %s2351_s2, %s1630_s24  ;;  %p1635_p7 = scmp.lt.u32.totalorder %s2351_s2, %s2407_s7 }
 0x297   : > { %p1636_p12 = scmp.lt.u32.totalorder %s1634_s23, %s1630_s24  ;;  %p1638_p1 = scmp.lt.u32.totalorder %s1630_s24, %s2351_s2 }
 0x298   : > { %p1632_p5 = pnand %p1631_p8, %p2439_p2 }
 0x299   : > { %p1637_p0 = por %p1636_p12, %p1635_p7 }
 0x29a   : > { %p1633_p13 = pneg %p1632_p5 }
 0x29b   : > { %p1639_p4 = por %p1638_p1, %p1637_p0 }
 0x29d   : > { %p1640_p6 = pnand %p1639_p4, %p1633_p13 }
 0x29f   : > { %1643 = shalt.err (!%p1640_p6)
}
 0x2a0   : > { %1266 = dma.vmem_to_hbm [thread:$0]  (%p2439_p2), %s2353_s11, 128, %s2351_s2, %s1017_s14  }
 0x2a1 PF: > { %s2440_s10 = sld [smem:[#allocation20_spill]]  ;;  %s1043_s19 = sand.u32 1, %s1694_s26  }
 0x2a2   : > { %p2442_p3 = scmp.ge.s32.totalorder %s1714_s8, 2  ;;  %s1044_s18 = scalar_lea.sflag [#allocation5], %s1043_s19 }
 0x2a7   : > { %p2441_p10 = scmp.ne.s32.totalorder %s2440_s10, 0 }
 0x2a9   : > { %p1286_p11 = pnand %p2442_p3, %p2441_p10 }
 0x2ab   : > { %1689 = dma.done.wait (!%p1286_p11), %s1044_s18, 128  }
 0x2ac   : > { %1691 = vsyncadd (!%p1286_p11), %s1044_s18, 4294967168  ;;  %s29_s8 = sadd.s32 1, %s1714_s8   ;;  %s2443_s26 = smov %s1698_s27 }
 0x2ad   : > { %p26_p9 = scmp.ge.s32.totalorder %s29_s8, 4   ;;  %s2444_s27 = smov %s1702_s28 }
 0x2ae   : > { %s2445_s28 = smov %s1962_s16  ;;  %s2446_s29 = smov %s1710_s30 }
 0x2af   : > { %s2447_s30 = smov %s2449_s9  ;;  %28 = sbr.rel (!%p26_p9) target bundleno = 15 (0xf), region = 119 }
 0x2b6   :  { %1049 = vsyncpa [#allocation4], 1 }
 0x2b7   :  { %1051 = vsyncpa [#allocation4 + $0x1], 1 }
 0x2b8   :  { %1052 = vsyncpa [#allocation8], 1 }
 0x2b9   :  { %1054 = vsyncpa [#allocation8 + $0x1], 1 }
 0x2ba   :  { %1055 = vsyncpa [#allocation11], 1 }
 0x2bb   :  { %1056 = vsyncpa [#allocation5], 1 }
 0x2bc   :  { %1058 = vsyncpa [#allocation5 + $0x1], 1 }
 0x2bd   :  { %1059 = vsyncpa [#allocation6], 1 }
 0x2be   :  { %1061 = vsyncpa [#allocation6 + $0x1], 1 }

</bundles_post_ra>
